<compile_context>
chip_gen: v7x
topology: tpu7x:2x2x1
jax: 0.10.0
libtpu: 0.0.40
codegen_flags: <defaults>
</compile_context>

<pallas_src>
import functools

import jax
import jax.numpy as jnp
import numpy as np
from jax.experimental import pallas as pl
from jax.experimental.pallas import tpu as pltpu


def _cdiv(a, b):
    return (a + b - 1) // b


def _round_up(x, m):
    return ((x + m - 1) // m) * m


# ----------------------------------------------------------------------------
# Pallas kernel
# ----------------------------------------------------------------------------
def _rightloss_kernel(pred_ref, tgt_ref, grid_ref, out_ref, *,
                      A, C, anchors_n, stride_n):
    """Accumulates four per-lane loss slabs into out_ref (4, 8, 128)."""
    K = 5 + C
    CT = 11
    f32 = jnp.float32
    TS = pred_ref.shape[1]                 # rows per grid step (multiple of 8)

    s = pl.program_id(1)                   # reduction ("arbitrary") axis

    @pl.when(s == 0)
    def _init():
        out_ref[...] = jnp.zeros_like(out_ref)

    def sigmoid(x):                        # single EUP op (tanh) vs exp + div
        return 0.5 * (jnp.tanh(0.5 * x) + 1.0)

    def bce(x, z):                         # BCEWithLogits, numerically stable
        return jnp.maximum(x, 0.0) - x * z + jnp.log(1.0 + jnp.exp(-jnp.abs(x)))

    # Unrolled sub-slab loop: every temporary is exactly one (8,128) vreg.
    for u in range(TS // 8):
        r0 = u * 8
        gxn = grid_ref[0, r0:r0 + 8, :]    # pre-normalized grid x (f32)
        gyn = grid_ref[1, r0:r0 + 8, :]    # pre-normalized grid y
        valid = grid_ref[2, r0:r0 + 8, :]  # 1.0 real / 0.0 padding

        conf_l = jnp.zeros((8, 128), f32)
        cls_l = jnp.zeros((8, 128), f32)
        bbox_l = jnp.zeros((8, 128), f32)
        iou_l = jnp.zeros((8, 128), f32)

        for a in range(A):                 # unrolled: A is small & static
            pb = a * K
            tb = a * CT
            awn, ahn = anchors_n[a]        # anchor_wh * stride / input_size

            def ldp(c, _pb=pb, _r0=r0):
                return pred_ref[_pb + c, _r0:_r0 + 8, :].astype(f32)

            def ldt(c, _tb=tb, _r0=r0):
                return tgt_ref[_tb + c, _r0:_r0 + 8, :]

            tx = ldp(0); ty = ldp(1); tw = ldp(2); th = ldp(3)
            conf_logit = ldp(4)

            gt_obj = ldt(0); gt_cls = ldt(1)
            gt_tx = ldt(2); gt_ty = ldt(3)
            gt_tw = ldt(4); gt_th = ldt(5)
            gt_w = ldt(6)
            gx1 = ldt(7); gy1 = ldt(8); gx2 = ldt(9); gy2 = ldt(10)

            # ----------- decode_boxes (normalized image coordinates) --------
            cxn = sigmoid(tx) * stride_n + gxn
            cyn = sigmoid(ty) * stride_n + gyn
            bwn = jnp.exp(tw) * awn
            bhn = jnp.exp(th) * ahn
            hw = 0.5 * bwn
            hh = 0.5 * bhn
            px1 = cxn - hw; px2 = cxn + hw
            py1 = cyn - hh; py2 = cyn + hh

            # ----------------------- IoU vs GT boxes ------------------------
            ix1 = jnp.maximum(px1, gx1); iy1 = jnp.maximum(py1, gy1)
            ix2 = jnp.minimum(px2, gx2); iy2 = jnp.minimum(py2, gy2)
            area_p = bwn * bhn
            area_g = (gx2 - gx1) * (gy2 - gy1)
            en = jnp.where(jnp.logical_and(ix1 < ix2, iy1 < iy2), 1.0, 0.0)
            area_i = (ix2 - ix1) * (iy2 - iy1) * en
            union = area_p + area_g - area_i       # > 0 (area_p > 0 always)
            r = pl.reciprocal(union, approx=True)
            r = r * (2.0 - union * r)              # 1 Newton step -> ~f32 acc
            iou = area_i * r

            gt_mask = jnp.where(gt_w > 0.0, 1.0, 0.0)

            # -------------------- conf: MSEWithLogitsLoss -------------------
            sc = jnp.clip(sigmoid(conf_logit), 0.0001, 1.0 - 0.0001)
            pos_id = jnp.where(gt_obj == 1.0, 1.0, 0.0)
            neg_id = jnp.where(gt_obj == 0.0, 1.0, 0.0)
            # only the negative term needs the padding mask (pos/cls/bbox/iou
            # are already zeroed by gt_obj/gt_mask/gt_w in the padded lanes)
            conf_l += 5.0 * pos_id * (sc - iou) ** 2 + (neg_id * valid) * (sc * sc)

            # ----- cls: cross-entropy, single pass over cached logits -------
            logits = [ldp(5 + c) for c in range(C)]   # loaded exactly once
            m = logits[0]
            for c in range(1, C):
                m = jnp.maximum(m, logits[c])
            ssum = jnp.zeros((8, 128), f32)
            picked = jnp.zeros((8, 128), f32)
            for c in range(C):
                ssum = ssum + jnp.exp(logits[c] - m)
                picked = picked + jnp.where(gt_cls == float(c), logits[c], 0.0)
            ce = (jnp.log(ssum) + m) - picked
            cls_l += ce * gt_mask

            # -------------- txty: BCEWithLogits, twth: MSE ------------------
            txty = bce(tx, gt_tx) + bce(ty, gt_ty)
            twth = (tw - gt_tw) ** 2 + (th - gt_th) ** 2
            bbox_l += (txty + twth) * (gt_w * gt_mask)

            # ----------------- iou: SmoothL1(iou, gt_iou) -------------------
            d = iou - gt_mask                       # gt_iou == gt_mask
            ad = jnp.abs(d)
            sl1 = jnp.where(ad < 1.0, 0.5 * d * d, ad - 0.5)
            iou_l += sl1 * gt_mask

        # accumulate directly into the resident output block (no scratch)
        out_ref[0] = out_ref[0] + conf_l
        out_ref[1] = out_ref[1] + cls_l
        out_ref[2] = out_ref[2] + bbox_l
        out_ref[3] = out_ref[3] + iou_l


# ----------------------------------------------------------------------------
# Wrapper
# ----------------------------------------------------------------------------
class RightLossPallas:
    def __init__(self, anchor_pre_wh, kinds_number=20, grid_number=(13, 13),
                 image_size=(416, 416), num_parallel=2, max_row_tile=32):
        self.num_anchors = len(anchor_pre_wh)
        self.num_classes = kinds_number
        self.stride = image_size[0] // grid_number[0]
        self.input_size = image_size[0]
        self.anchors = tuple((float(w), float(h)) for (w, h) in anchor_pre_wh)
        self.num_parallel = num_parallel      # >1 lets v7x use both TCs
        self.max_row_tile = max_row_tile      # sublane rows per grid step

    def __call__(self, prediction, target):
        B, abC, H, W = prediction.shape
        A = self.num_anchors
        C = self.num_classes
        K = 5 + C
        CT = 11
        assert abC == A * K
        P = H * W
        L = B * P                              # batch merged into positions

        rows = _cdiv(L, 128)
        n_par = self.num_parallel if rows >= 2 * 8 else 1
        rows_chunk = _cdiv(rows, n_par)
        TS = min(self.max_row_tile, _round_up(rows_chunk, 8))
        n_steps = _cdiv(rows_chunk, TS)
        R = n_par * n_steps * TS
        Lpad = R * 128

        # Channel-major relayout: one copy pass (transpose), the zero-pad is
        # fused into it (no standalone pad pass).  Prediction keeps its input
        # dtype for the DMA (feed bf16 for ~2x less HBM traffic on v5e/v6e);
        # target stays f32 so the class-id exact-equality test remains safe.
        pred = prediction.reshape(B, A * K, P)
        pred = jnp.transpose(pred, (1, 0, 2)).reshape(A * K, L)
        tgt = target.reshape(B, P, A, CT)
        tgt = jnp.transpose(tgt, (2, 3, 0, 1)).reshape(A * CT, L)
        if Lpad != L:
            pred = jnp.pad(pred, ((0, 0), (0, Lpad - L)))
            tgt = jnp.pad(tgt, ((0, 0), (0, Lpad - L)))
        pred = pred.reshape(A * K, R, 128)
        tgt = tgt.reshape(A * CT, R, 128).astype(jnp.float32)

        # lane-dense, pre-normalized grid-x / grid-y / validity rows
        stride_n = float(self.stride) / float(self.input_size)
        q = np.arange(Lpad, dtype=np.int64)
        p_idx = q % P
        gxn = (p_idx % W).astype(np.float32) * np.float32(stride_n)
        gyn = (p_idx // W).astype(np.float32) * np.float32(stride_n)
        valid = (q < L).astype(np.float32)
        grid_rows = jnp.asarray(np.stack([gxn, gyn, valid], 0).reshape(3, R, 128))

        anchors_n = tuple((w * stride_n, h * stride_n) for (w, h) in self.anchors)

        kernel = functools.partial(_rightloss_kernel, A=A, C=C,
                                   anchors_n=anchors_n, stride_n=stride_n)

        # explicit VMEM budget (v7x: 64 MiB physical / 32 MiB default scoped)
        blk_bytes = (A * K * TS * 128 * pred.dtype.itemsize
                     + A * CT * TS * 128 * 4 + 3 * TS * 128 * 4)
        vmem_limit = int(min(max(4 * blk_bytes + (4 << 20), 16 << 20), 64 << 20))

        partial_out = pl.pallas_call(
            kernel,
            out_shape=jax.ShapeDtypeStruct((n_par, 4, 8, 128), jnp.float32),
            grid_spec=pltpu.PrefetchScalarGridSpec(
                num_scalar_prefetch=0,
                grid=(n_par, n_steps),
                in_specs=[
                    pl.BlockSpec((A * K, TS, 128),
                                 lambda p, s: (0, p * n_steps + s, 0)),
                    pl.BlockSpec((A * CT, TS, 128),
                                 lambda p, s: (0, p * n_steps + s, 0)),
                    pl.BlockSpec((3, TS, 128),
                                 lambda p, s: (0, p * n_steps + s, 0)),
                ],
                out_specs=pl.BlockSpec((None, 4, 8, 128),
                                       lambda p, s: (p, 0, 0, 0)),
            ),
            compiler_params=pltpu.CompilerParams(
                dimension_semantics=("parallel", "arbitrary"),
                vmem_limit_bytes=vmem_limit),
        )(pred, tgt, grid_rows)
        # (optional on v5e if DMA stays exposed: pipeline_mode=pl.Buffered(3)
        #  on the pred/tgt in_specs)

        # tiny final reduce done by XLA: (n_par, 4, 8, 128) -> 4 scalars
        sums = jnp.sum(partial_out, axis=(0, 2, 3)) / B
        conf_loss, cls_loss, bbox_loss, iou_loss = sums[0], sums[1], sums[2], sums[3]
        return {
            "total_loss": conf_loss + cls_loss + bbox_loss,
            "position_loss": bbox_loss,
            "conf_loss": conf_loss,
            "cls_prob_loss": cls_loss,
            "iou_loss": iou_loss,
        }


# ----------------------------------------------------------------------------
# Pure-JAX reference (same math, no Pallas) for a numerical sanity check.
# ----------------------------------------------------------------------------
def _reference(prediction, target, module: RightLossPallas):
    B, abC, H, W = prediction.shape
    A, C = module.num_anchors, module.num_classes
    K = 5 + C
    pred = jnp.transpose(prediction.reshape(B, A, K, H, W), (0, 3, 4, 1, 2))
    pred = pred.reshape(B, H * W * A, K).astype(jnp.float32)
    tgt = target.reshape(B, H * W * A, -1).astype(jnp.float32)

    gy, gx = np.meshgrid(np.arange(H), np.arange(W), indexing="ij")
    grid_xy = np.stack([gx, gy], axis=-1).reshape(H * W, 2).astype(np.float32)
    grid_flat = jnp.asarray(np.repeat(grid_xy, A, axis=0))                # [N, 2]
    anchor_flat = jnp.asarray(np.tile(np.asarray(module.anchors, np.float32),
                                      (H * W, 1)))                        # [N, 2]

    txty, twth = pred[:, :, 0:2], pred[:, :, 2:4]
    conf_logit, cls_logit = pred[:, :, 4], pred[:, :, 5:]
    sig = lambda x: 1.0 / (1.0 + jnp.exp(-x))

    xy = (sig(txty) + grid_flat[None]) * module.stride
    wh = (jnp.exp(twth) * anchor_flat[None]) * module.stride
    x1y1 = (xy - 0.5 * wh) / module.input_size
    x2y2 = (xy + 0.5 * wh) / module.input_size
    g1, g2 = tgt[:, :, 7:9], tgt[:, :, 9:11]
    tl, br = jnp.maximum(x1y1, g1), jnp.minimum(x2y2, g2)
    area_a = jnp.prod(x2y2 - x1y1, -1)
    area_b = jnp.prod(g2 - g1, -1)
    en = jnp.prod((tl < br).astype(jnp.float32), -1)
    area_i = jnp.prod(br - tl, -1) * en
    iou = area_i / (area_a + area_b - area_i)

    gt_conf, gt_obj = iou, tgt[:, :, 0]
    gt_cls = tgt[:, :, 1].astype(jnp.int32)
    gt_txty, gt_twth, gt_w = tgt[:, :, 2:4], tgt[:, :, 4:6], tgt[:, :, 6]
    gt_mask = (gt_w > 0.0).astype(jnp.float32)

    sc = jnp.clip(sig(conf_logit), 1e-4, 1 - 1e-4)
    conf_loss = jnp.sum(5.0 * (gt_obj == 1.0) * (sc - gt_conf) ** 2
                        + 1.0 * (gt_obj == 0.0) * sc ** 2) / B
    logp = jax.nn.log_softmax(cls_logit, axis=-1)
    ce = -jnp.take_along_axis(logp, gt_cls[:, :, None], axis=-1)[:, :, 0]
    cls_loss = jnp.sum(ce * gt_mask) / B
    bce = jnp.maximum(txty, 0) - txty * gt_txty + jnp.log1p(jnp.exp(-jnp.abs(txty)))
    txty_loss = jnp.sum(jnp.sum(bce, -1) * gt_w * gt_mask) / B
    twth_loss = jnp.sum(jnp.sum((twth - gt_twth) ** 2, -1) * gt_w * gt_mask) / B
    d = iou - gt_mask
    sl1 = jnp.where(jnp.abs(d) < 1.0, 0.5 * d * d, jnp.abs(d) - 0.5)
    iou_loss = jnp.sum(sl1 * gt_mask) / B
    bbox = txty_loss + twth_loss
    return {"total_loss": conf_loss + cls_loss + bbox, "position_loss": bbox,
            "conf_loss": conf_loss, "cls_prob_loss": cls_loss, "iou_loss": iou_loss}


if __name__ == "__main__":
    # small config consistent with the module defaults
    B, A, C = 2, 2, 8
    grid_number = (16, 16)
    image_size = (128, 128)
    anchor_pre_wh = ((1.0, 1.5), (2.5, 3.0))
    H, W = grid_number
    N = H * W * A
    abC = A * (5 + C)

    key = jax.random.PRNGKey(0)
    k_pred, k_obj, k_cls, k_txty, k_twth, k_w, k_c, k_s = jax.random.split(key, 8)

    # feed the kernel bf16 prediction (halves the DMA bytes on v5e/v6e);
    # the reference upcasts the *same* bf16 values so the comparison is exact.
    prediction = jax.random.normal(k_pred, (B, abC, H, W),
                                   dtype=jnp.float32).astype(jnp.bfloat16)

    # build target [B, N, 11] = [obj, cls, tx, ty, tw, th, weight, x1, y1, x2, y2]
    obj = jax.random.bernoulli(k_obj, 0.3, (B, N)).astype(jnp.float32)
    cls_id = jax.random.randint(k_cls, (B, N), 0, C).astype(jnp.float32)
    txty_gt = jax.random.uniform(k_txty, (B, N, 2), minval=0.05, maxval=0.95)
    twth_gt = jax.random.normal(k_twth, (B, N, 2)) * 0.5
    weight = obj * jax.random.uniform(k_w, (B, N), minval=0.5, maxval=1.5)
    cxy = jax.random.uniform(k_c, (B, N, 2), minval=0.2, maxval=0.8)
    bwh = jax.random.uniform(k_s, (B, N, 2), minval=0.05, maxval=0.3)
    box = jnp.concatenate([cxy - 0.5 * bwh, cxy + 0.5 * bwh], axis=-1)
    target = jnp.concatenate(
        [obj[..., None], cls_id[..., None], txty_gt, twth_gt,
         weight[..., None], box], axis=-1).astype(jnp.float32)

    loss_mod = RightLossPallas(anchor_pre_wh, kinds_number=C,
                               grid_number=grid_number, image_size=image_size)

    out = jax.jit(lambda p, t: loss_mod(p, t))(prediction, target)
    jax.block_until_ready(out)

    ref = _reference(prediction, target, loss_mod)
    for k in out:
        np.testing.assert_allclose(np.asarray(out[k]), np.asarray(ref[k]),
                                   rtol=1e-3, atol=1e-3)
    print("KERNEL_OK")
</pallas_src>

<mosaic_0001>
module attributes {stable_mosaic.version = 11 : i64} {
  func.func @_rightloss_kernel(%arg0: i32, %arg1: i32, %arg2: memref<26x8x128xbf16, #tpu.memory_space<vmem>>, %arg3: memref<22x8x128xf32, #tpu.memory_space<vmem>>, %arg4: memref<3x8x128xf32, #tpu.memory_space<vmem>>, %arg5: memref<1x4x8x128xf32, #tpu.memory_space<vmem>>) attributes {dimension_semantics = [#tpu.dimension_semantics<parallel>, #tpu.dimension_semantics<arbitrary>], iteration_bounds = array<i64: 1, 1>, scalar_prefetch = 0 : i64, scratch_operands = 0 : i64, tpu.core_type = #tpu.core_type<tc>, window_params = [{transform_indices = @transform_0, window_bounds = array<i64: 26, 8, 128>}, {transform_indices = @transform_1, window_bounds = array<i64: 22, 8, 128>}, {transform_indices = @transform_2, window_bounds = array<i64: 3, 8, 128>}, {transform_indices = @transform_3, window_bounds = array<i64: 1, 4, 8, 128>}]} {
    %c0_i32 = arith.constant 0 : i32
    %0 = arith.cmpi eq, %arg1, %c0_i32 : i32
    %1 = arith.extui %0 : i1 to i32
    %c0_i32_0 = arith.constant 0 : i32
    %2 = arith.cmpi ne, %1, %c0_i32_0 : i32
    scf.if %2 {
      %cst_277 = arith.constant 0.000000e+00 : f32
      %599 = vector.broadcast %cst_277 : f32 to vector<4x8x128xf32>
      %c0_278 = arith.constant 0 : index
      %c0_279 = arith.constant 0 : index
      %c0_280 = arith.constant 0 : index
      %c0_281 = arith.constant 0 : index
      %600 = vector.load %arg5[%c0_278, %c0_279, %c0_280, %c0_281] : memref<1x4x8x128xf32, #tpu.memory_space<vmem>>, vector<1x4x8x128xf32>
      %601 = vector.shape_cast %600 : vector<1x4x8x128xf32> to vector<4x8x128xf32>
      %602 = vector.shape_cast %599 : vector<4x8x128xf32> to vector<1x4x8x128xf32>
      tpu.vector_store %arg5[%c0_278, %c0_279, %c0_280, %c0_281], %602 {strides = array<i32>} : memref<1x4x8x128xf32, #tpu.memory_space<vmem>>, vector<1x4x8x128xf32>,
    } else {
    }
    %c0 = arith.constant 0 : index
    %c0_1 = arith.constant 0 : index
    %c0_2 = arith.constant 0 : index
    %3 = vector.load %arg4[%c0, %c0_1, %c0_2] : memref<3x8x128xf32, #tpu.memory_space<vmem>>, vector<1x8x128xf32>
    %4 = vector.shape_cast %3 : vector<1x8x128xf32> to vector<8x128xf32>
    %c1 = arith.constant 1 : index
    %c0_3 = arith.constant 0 : index
    %c0_4 = arith.constant 0 : index
    %5 = vector.load %arg4[%c1, %c0_3, %c0_4] : memref<3x8x128xf32, #tpu.memory_space<vmem>>, vector<1x8x128xf32>
    %6 = vector.shape_cast %5 : vector<1x8x128xf32> to vector<8x128xf32>
    %c2 = arith.constant 2 : index
    %c0_5 = arith.constant 0 : index
    %c0_6 = arith.constant 0 : index
    %7 = vector.load %arg4[%c2, %c0_5, %c0_6] : memref<3x8x128xf32, #tpu.memory_space<vmem>>, vector<1x8x128xf32>
    %8 = vector.shape_cast %7 : vector<1x8x128xf32> to vector<8x128xf32>
    %cst = arith.constant 0.000000e+00 : f32
    %9 = vector.broadcast %cst : f32 to vector<8x128xf32>
    %cst_7 = arith.constant 0.000000e+00 : f32
    %10 = vector.broadcast %cst_7 : f32 to vector<8x128xf32>
    %cst_8 = arith.constant 0.000000e+00 : f32
    %11 = vector.broadcast %cst_8 : f32 to vector<8x128xf32>
    %cst_9 = arith.constant 0.000000e+00 : f32
    %12 = vector.broadcast %cst_9 : f32 to vector<8x128xf32>
    %c0_10 = arith.constant 0 : index
    %c0_11 = arith.constant 0 : index
    %c0_12 = arith.constant 0 : index
    %13 = vector.load %arg2[%c0_10, %c0_11, %c0_12] : memref<26x8x128xbf16, #tpu.memory_space<vmem>>, vector<1x8x128xbf16>
    %14 = vector.shape_cast %13 : vector<1x8x128xbf16> to vector<8x128xbf16>
    %15 = arith.extf %14 : vector<8x128xbf16> to vector<8x128xf32>
    %c1_13 = arith.constant 1 : index
    %c0_14 = arith.constant 0 : index
    %c0_15 = arith.constant 0 : index
    %16 = vector.load %arg2[%c1_13, %c0_14, %c0_15] : memref<26x8x128xbf16, #tpu.memory_space<vmem>>, vector<1x8x128xbf16>
    %17 = vector.shape_cast %16 : vector<1x8x128xbf16> to vector<8x128xbf16>
    %18 = arith.extf %17 : vector<8x128xbf16> to vector<8x128xf32>
    %c2_16 = arith.constant 2 : index
    %c0_17 = arith.constant 0 : index
    %c0_18 = arith.constant 0 : index
    %19 = vector.load %arg2[%c2_16, %c0_17, %c0_18] : memref<26x8x128xbf16, #tpu.memory_space<vmem>>, vector<1x8x128xbf16>
    %20 = vector.shape_cast %19 : vector<1x8x128xbf16> to vector<8x128xbf16>
    %21 = arith.extf %20 : vector<8x128xbf16> to vector<8x128xf32>
    %c3 = arith.constant 3 : index
    %c0_19 = arith.constant 0 : index
    %c0_20 = arith.constant 0 : index
    %22 = vector.load %arg2[%c3, %c0_19, %c0_20] : memref<26x8x128xbf16, #tpu.memory_space<vmem>>, vector<1x8x128xbf16>
    %23 = vector.shape_cast %22 : vector<1x8x128xbf16> to vector<8x128xbf16>
    %24 = arith.extf %23 : vector<8x128xbf16> to vector<8x128xf32>
    %c4 = arith.constant 4 : index
    %c0_21 = arith.constant 0 : index
    %c0_22 = arith.constant 0 : index
    %25 = vector.load %arg2[%c4, %c0_21, %c0_22] : memref<26x8x128xbf16, #tpu.memory_space<vmem>>, vector<1x8x128xbf16>
    %26 = vector.shape_cast %25 : vector<1x8x128xbf16> to vector<8x128xbf16>
    %27 = arith.extf %26 : vector<8x128xbf16> to vector<8x128xf32>
    %c0_23 = arith.constant 0 : index
    %c0_24 = arith.constant 0 : index
    %c0_25 = arith.constant 0 : index
    %28 = vector.load %arg3[%c0_23, %c0_24, %c0_25] : memref<22x8x128xf32, #tpu.memory_space<vmem>>, vector<1x8x128xf32>
    %29 = vector.shape_cast %28 : vector<1x8x128xf32> to vector<8x128xf32>
    %c1_26 = arith.constant 1 : index
    %c0_27 = arith.constant 0 : index
    %c0_28 = arith.constant 0 : index
    %30 = vector.load %arg3[%c1_26, %c0_27, %c0_28] : memref<22x8x128xf32, #tpu.memory_space<vmem>>, vector<1x8x128xf32>
    %31 = vector.shape_cast %30 : vector<1x8x128xf32> to vector<8x128xf32>
    %c2_29 = arith.constant 2 : index
    %c0_30 = arith.constant 0 : index
    %c0_31 = arith.constant 0 : index
    %32 = vector.load %arg3[%c2_29, %c0_30, %c0_31] : memref<22x8x128xf32, #tpu.memory_space<vmem>>, vector<1x8x128xf32>
    %33 = vector.shape_cast %32 : vector<1x8x128xf32> to vector<8x128xf32>
    %c3_32 = arith.constant 3 : index
    %c0_33 = arith.constant 0 : index
    %c0_34 = arith.constant 0 : index
    %34 = vector.load %arg3[%c3_32, %c0_33, %c0_34] : memref<22x8x128xf32, #tpu.memory_space<vmem>>, vector<1x8x128xf32>
    %35 = vector.shape_cast %34 : vector<1x8x128xf32> to vector<8x128xf32>
    %c4_35 = arith.constant 4 : index
    %c0_36 = arith.constant 0 : index
    %c0_37 = arith.constant 0 : index
    %36 = vector.load %arg3[%c4_35, %c0_36, %c0_37] : memref<22x8x128xf32, #tpu.memory_space<vmem>>, vector<1x8x128xf32>
    %37 = vector.shape_cast %36 : vector<1x8x128xf32> to vector<8x128xf32>
    %c5 = arith.constant 5 : index
    %c0_38 = arith.constant 0 : index
    %c0_39 = arith.constant 0 : index
    %38 = vector.load %arg3[%c5, %c0_38, %c0_39] : memref<22x8x128xf32, #tpu.memory_space<vmem>>, vector<1x8x128xf32>
    %39 = vector.shape_cast %38 : vector<1x8x128xf32> to vector<8x128xf32>
    %c6 = arith.constant 6 : index
    %c0_40 = arith.constant 0 : index
    %c0_41 = arith.constant 0 : index
    %40 = vector.load %arg3[%c6, %c0_40, %c0_41] : memref<22x8x128xf32, #tpu.memory_space<vmem>>, vector<1x8x128xf32>
    %41 = vector.shape_cast %40 : vector<1x8x128xf32> to vector<8x128xf32>
    %c7 = arith.constant 7 : index
    %c0_42 = arith.constant 0 : index
    %c0_43 = arith.constant 0 : index
    %42 = vector.load %arg3[%c7, %c0_42, %c0_43] : memref<22x8x128xf32, #tpu.memory_space<vmem>>, vector<1x8x128xf32>
    %43 = vector.shape_cast %42 : vector<1x8x128xf32> to vector<8x128xf32>
    %c8 = arith.constant 8 : index
    %c0_44 = arith.constant 0 : index
    %c0_45 = arith.constant 0 : index
    %44 = vector.load %arg3[%c8, %c0_44, %c0_45] : memref<22x8x128xf32, #tpu.memory_space<vmem>>, vector<1x8x128xf32>
    %45 = vector.shape_cast %44 : vector<1x8x128xf32> to vector<8x128xf32>
    %c9 = arith.constant 9 : index
    %c0_46 = arith.constant 0 : index
    %c0_47 = arith.constant 0 : index
    %46 = vector.load %arg3[%c9, %c0_46, %c0_47] : memref<22x8x128xf32, #tpu.memory_space<vmem>>, vector<1x8x128xf32>
    %47 = vector.shape_cast %46 : vector<1x8x128xf32> to vector<8x128xf32>
    %c10 = arith.constant 10 : index
    %c0_48 = arith.constant 0 : index
    %c0_49 = arith.constant 0 : index
    %48 = vector.load %arg3[%c10, %c0_48, %c0_49] : memref<22x8x128xf32, #tpu.memory_space<vmem>>, vector<1x8x128xf32>
    %49 = vector.shape_cast %48 : vector<1x8x128xf32> to vector<8x128xf32>
    %cst_50 = arith.constant 5.000000e-01 : f32
    %50 = vector.broadcast %cst_50 : f32 to vector<8x128xf32>
    %51 = arith.mulf %50, %15 : vector<8x128xf32>
    %52 = math.tanh %51 : vector<8x128xf32>
    %cst_51 = arith.constant 1.000000e+00 : f32
    %53 = vector.broadcast %cst_51 : f32 to vector<8x128xf32>
    %54 = arith.addf %52, %53 : vector<8x128xf32>
    %cst_52 = arith.constant 5.000000e-01 : f32
    %55 = vector.broadcast %cst_52 : f32 to vector<8x128xf32>
    %56 = arith.mulf %55, %54 : vector<8x128xf32>
    %cst_53 = arith.constant 6.250000e-02 : f32
    %57 = vector.broadcast %cst_53 : f32 to vector<8x128xf32>
    %58 = arith.mulf %56, %57 : vector<8x128xf32>
    %59 = arith.addf %58, %4 : vector<8x128xf32>
    %cst_54 = arith.constant 5.000000e-01 : f32
    %60 = vector.broadcast %cst_54 : f32 to vector<8x128xf32>
    %61 = arith.mulf %60, %18 : vector<8x128xf32>
    %62 = math.tanh %61 : vector<8x128xf32>
    %cst_55 = arith.constant 1.000000e+00 : f32
    %63 = vector.broadcast %cst_55 : f32 to vector<8x128xf32>
    %64 = arith.addf %62, %63 : vector<8x128xf32>
    %cst_56 = arith.constant 5.000000e-01 : f32
    %65 = vector.broadcast %cst_56 : f32 to vector<8x128xf32>
    %66 = arith.mulf %65, %64 : vector<8x128xf32>
    %cst_57 = arith.constant 6.250000e-02 : f32
    %67 = vector.broadcast %cst_57 : f32 to vector<8x128xf32>
    %68 = arith.mulf %66, %67 : vector<8x128xf32>
    %69 = arith.addf %68, %6 : vector<8x128xf32>
    %70 = math.exp %21 : vector<8x128xf32>
    %cst_58 = arith.constant 6.250000e-02 : f32
    %71 = vector.broadcast %cst_58 : f32 to vector<8x128xf32>
    %72 = arith.mulf %70, %71 : vector<8x128xf32>
    %73 = math.exp %24 : vector<8x128xf32>
    %cst_59 = arith.constant 9.375000e-02 : f32
    %74 = vector.broadcast %cst_59 : f32 to vector<8x128xf32>
    %75 = arith.mulf %73, %74 : vector<8x128xf32>
    %cst_60 = arith.constant 5.000000e-01 : f32
    %76 = vector.broadcast %cst_60 : f32 to vector<8x128xf32>
    %77 = arith.mulf %76, %72 : vector<8x128xf32>
    %cst_61 = arith.constant 5.000000e-01 : f32
    %78 = vector.broadcast %cst_61 : f32 to vector<8x128xf32>
    %79 = arith.mulf %78, %75 : vector<8x128xf32>
    %80 = arith.subf %59, %77 : vector<8x128xf32>
    %81 = arith.addf %59, %77 : vector<8x128xf32>
    %82 = arith.subf %69, %79 : vector<8x128xf32>
    %83 = arith.addf %69, %79 : vector<8x128xf32>
    %84 = arith.maximumf %80, %43 : vector<8x128xf32>
    %85 = arith.maximumf %82, %45 : vector<8x128xf32>
    %86 = arith.minimumf %81, %47 : vector<8x128xf32>
    %87 = arith.minimumf %83, %49 : vector<8x128xf32>
    %88 = arith.mulf %72, %75 : vector<8x128xf32>
    %89 = arith.subf %47, %43 : vector<8x128xf32>
    %90 = arith.subf %49, %45 : vector<8x128xf32>
    %91 = arith.mulf %89, %90 : vector<8x128xf32>
    %92 = arith.cmpf olt, %84, %86 : vector<8x128xf32>
    %93 = arith.cmpf olt, %85, %87 : vector<8x128xf32>
    %94 = arith.andi %92, %93 : vector<8x128xi1>
    %cst_62 = arith.constant 1.000000e+00 : f32
    %cst_63 = arith.constant 0.000000e+00 : f32
    %95 = vector.broadcast %cst_62 : f32 to vector<8x128xf32>
    %96 = vector.broadcast %cst_63 : f32 to vector<8x128xf32>
    %97 = arith.select %94, %95, %96 : vector<8x128xi1>, vector<8x128xf32>
    %98 = arith.subf %86, %84 : vector<8x128xf32>
    %99 = arith.subf %87, %85 : vector<8x128xf32>
    %100 = arith.mulf %98, %99 : vector<8x128xf32>
    %101 = arith.mulf %100, %97 : vector<8x128xf32>
    %102 = arith.addf %88, %91 : vector<8x128xf32>
    %103 = arith.subf %102, %101 : vector<8x128xf32>
    %104 = tpu.reciprocal %103 {approx = true} : vector<8x128xf32> -> vector<8x128xf32>
    %105 = arith.mulf %103, %104 : vector<8x128xf32>
    %cst_64 = arith.constant 2.000000e+00 : f32
    %106 = vector.broadcast %cst_64 : f32 to vector<8x128xf32>
    %107 = arith.subf %106, %105 : vector<8x128xf32>
    %108 = arith.mulf %104, %107 : vector<8x128xf32>
    %109 = arith.mulf %101, %108 : vector<8x128xf32>
    %cst_65 = arith.constant 0.000000e+00 : f32
    %110 = vector.broadcast %cst_65 : f32 to vector<8x128xf32>
    %111 = arith.cmpf ogt, %41, %110 : vector<8x128xf32>
    %cst_66 = arith.constant 1.000000e+00 : f32
    %cst_67 = arith.constant 0.000000e+00 : f32
    %112 = vector.broadcast %cst_66 : f32 to vector<8x128xf32>
    %113 = vector.broadcast %cst_67 : f32 to vector<8x128xf32>
    %114 = arith.select %111, %112, %113 : vector<8x128xi1>, vector<8x128xf32>
    %cst_68 = arith.constant 5.000000e-01 : f32
    %115 = vector.broadcast %cst_68 : f32 to vector<8x128xf32>
    %116 = arith.mulf %115, %27 : vector<8x128xf32>
    %117 = math.tanh %116 : vector<8x128xf32>
    %cst_69 = arith.constant 1.000000e+00 : f32
    %118 = vector.broadcast %cst_69 : f32 to vector<8x128xf32>
    %119 = arith.addf %117, %118 : vector<8x128xf32>
    %cst_70 = arith.constant 5.000000e-01 : f32
    %120 = vector.broadcast %cst_70 : f32 to vector<8x128xf32>
    %121 = arith.mulf %120, %119 : vector<8x128xf32>
    %cst_71 = arith.constant 9.99999974E-5 : f32
    %cst_72 = arith.constant 0.999899983 : f32
    %122 = vector.broadcast %cst_71 : f32 to vector<8x128xf32>
    %123 = arith.maximumf %122, %121 : vector<8x128xf32>
    %124 = vector.broadcast %cst_72 : f32 to vector<8x128xf32>
    %125 = arith.minimumf %124, %123 : vector<8x128xf32>
    %cst_73 = arith.constant 1.000000e+00 : f32
    %126 = vector.broadcast %cst_73 : f32 to vector<8x128xf32>
    %127 = arith.cmpf oeq, %29, %126 : vector<8x128xf32>
    %cst_74 = arith.constant 1.000000e+00 : f32
    %cst_75 = arith.constant 0.000000e+00 : f32
    %128 = vector.broadcast %cst_74 : f32 to vector<8x128xf32>
    %129 = vector.broadcast %cst_75 : f32 to vector<8x128xf32>
    %130 = arith.select %127, %128, %129 : vector<8x128xi1>, vector<8x128xf32>
    %cst_76 = arith.constant 0.000000e+00 : f32
    %131 = vector.broadcast %cst_76 : f32 to vector<8x128xf32>
    %132 = arith.cmpf oeq, %29, %131 : vector<8x128xf32>
    %cst_77 = arith.constant 1.000000e+00 : f32
    %cst_78 = arith.constant 0.000000e+00 : f32
    %133 = vector.broadcast %cst_77 : f32 to vector<8x128xf32>
    %134 = vector.broadcast %cst_78 : f32 to vector<8x128xf32>
    %135 = arith.select %132, %133, %134 : vector<8x128xi1>, vector<8x128xf32>
    %cst_79 = arith.constant 5.000000e+00 : f32
    %136 = vector.broadcast %cst_79 : f32 to vector<8x128xf32>
    %137 = arith.mulf %136, %130 : vector<8x128xf32>
    %138 = arith.subf %125, %109 : vector<8x128xf32>
    %139 = arith.mulf %138, %138 : vector<8x128xf32>
    %140 = arith.mulf %137, %139 : vector<8x128xf32>
    %141 = arith.mulf %135, %8 : vector<8x128xf32>
    %142 = arith.mulf %125, %125 : vector<8x128xf32>
    %143 = arith.mulf %141, %142 : vector<8x128xf32>
    %144 = arith.addf %140, %143 : vector<8x128xf32>
    %145 = arith.addf %9, %144 : vector<8x128xf32>
    %c5_80 = arith.constant 5 : index
    %c0_81 = arith.constant 0 : index
    %c0_82 = arith.constant 0 : index
    %146 = vector.load %arg2[%c5_80, %c0_81, %c0_82] : memref<26x8x128xbf16, #tpu.memory_space<vmem>>, vector<1x8x128xbf16>
    %147 = vector.shape_cast %146 : vector<1x8x128xbf16> to vector<8x128xbf16>
    %148 = arith.extf %147 : vector<8x128xbf16> to vector<8x128xf32>
    %c6_83 = arith.constant 6 : index
    %c0_84 = arith.constant 0 : index
    %c0_85 = arith.constant 0 : index
    %149 = vector.load %arg2[%c6_83, %c0_84, %c0_85] : memref<26x8x128xbf16, #tpu.memory_space<vmem>>, vector<1x8x128xbf16>
    %150 = vector.shape_cast %149 : vector<1x8x128xbf16> to vector<8x128xbf16>
    %151 = arith.extf %150 : vector<8x128xbf16> to vector<8x128xf32>
    %c7_86 = arith.constant 7 : index
    %c0_87 = arith.constant 0 : index
    %c0_88 = arith.constant 0 : index
    %152 = vector.load %arg2[%c7_86, %c0_87, %c0_88] : memref<26x8x128xbf16, #tpu.memory_space<vmem>>, vector<1x8x128xbf16>
    %153 = vector.shape_cast %152 : vector<1x8x128xbf16> to vector<8x128xbf16>
    %154 = arith.extf %153 : vector<8x128xbf16> to vector<8x128xf32>
    %c8_89 = arith.constant 8 : index
    %c0_90 = arith.constant 0 : index
    %c0_91 = arith.constant 0 : index
    %155 = vector.load %arg2[%c8_89, %c0_90, %c0_91] : memref<26x8x128xbf16, #tpu.memory_space<vmem>>, vector<1x8x128xbf16>
    %156 = vector.shape_cast %155 : vector<1x8x128xbf16> to vector<8x128xbf16>
    %157 = arith.extf %156 : vector<8x128xbf16> to vector<8x128xf32>
    %c9_92 = arith.constant 9 : index
    %c0_93 = arith.constant 0 : index
    %c0_94 = arith.constant 0 : index
    %158 = vector.load %arg2[%c9_92, %c0_93, %c0_94] : memref<26x8x128xbf16, #tpu.memory_space<vmem>>, vector<1x8x128xbf16>
    %159 = vector.shape_cast %158 : vector<1x8x128xbf16> to vector<8x128xbf16>
    %160 = arith.extf %159 : vector<8x128xbf16> to vector<8x128xf32>
    %c10_95 = arith.constant 10 : index
    %c0_96 = arith.constant 0 : index
    %c0_97 = arith.constant 0 : index
    %161 = vector.load %arg2[%c10_95, %c0_96, %c0_97] : memref<26x8x128xbf16, #tpu.memory_space<vmem>>, vector<1x8x128xbf16>
    %162 = vector.shape_cast %161 : vector<1x8x128xbf16> to vector<8x128xbf16>
    %163 = arith.extf %162 : vector<8x128xbf16> to vector<8x128xf32>
    %c11 = arith.constant 11 : index
    %c0_98 = arith.constant 0 : index
    %c0_99 = arith.constant 0 : index
    %164 = vector.load %arg2[%c11, %c0_98, %c0_99] : memref<26x8x128xbf16, #tpu.memory_space<vmem>>, vector<1x8x128xbf16>
    %165 = vector.shape_cast %164 : vector<1x8x128xbf16> to vector<8x128xbf16>
    %166 = arith.extf %165 : vector<8x128xbf16> to vector<8x128xf32>
    %c12 = arith.constant 12 : index
    %c0_100 = arith.constant 0 : index
    %c0_101 = arith.constant 0 : index
    %167 = vector.load %arg2[%c12, %c0_100, %c0_101] : memref<26x8x128xbf16, #tpu.memory_space<vmem>>, vector<1x8x128xbf16>
    %168 = vector.shape_cast %167 : vector<1x8x128xbf16> to vector<8x128xbf16>
    %169 = arith.extf %168 : vector<8x128xbf16> to vector<8x128xf32>
    %170 = arith.maximumf %148, %151 : vector<8x128xf32>
    %171 = arith.maximumf %170, %154 : vector<8x128xf32>
    %172 = arith.maximumf %171, %157 : vector<8x128xf32>
    %173 = arith.maximumf %172, %160 : vector<8x128xf32>
    %174 = arith.maximumf %173, %163 : vector<8x128xf32>
    %175 = arith.maximumf %174, %166 : vector<8x128xf32>
    %176 = arith.maximumf %175, %169 : vector<8x128xf32>
    %cst_102 = arith.constant 0.000000e+00 : f32
    %177 = vector.broadcast %cst_102 : f32 to vector<8x128xf32>
    %cst_103 = arith.constant 0.000000e+00 : f32
    %178 = vector.broadcast %cst_103 : f32 to vector<8x128xf32>
    %179 = arith.subf %148, %176 : vector<8x128xf32>
    %180 = math.exp %179 : vector<8x128xf32>
    %181 = arith.addf %177, %180 : vector<8x128xf32>
    %cst_104 = arith.constant 0.000000e+00 : f32
    %182 = vector.broadcast %cst_104 : f32 to vector<8x128xf32>
    %183 = arith.cmpf oeq, %31, %182 : vector<8x128xf32>
    %cst_105 = arith.constant 0.000000e+00 : f32
    %184 = vector.broadcast %cst_105 : f32 to vector<8x128xf32>
    %185 = arith.select %183, %148, %184 : vector<8x128xi1>, vector<8x128xf32>
    %186 = arith.addf %178, %185 : vector<8x128xf32>
    %187 = arith.subf %151, %176 : vector<8x128xf32>
    %188 = math.exp %187 : vector<8x128xf32>
    %189 = arith.addf %181, %188 : vector<8x128xf32>
    %cst_106 = arith.constant 1.000000e+00 : f32
    %190 = vector.broadcast %cst_106 : f32 to vector<8x128xf32>
    %191 = arith.cmpf oeq, %31, %190 : vector<8x128xf32>
    %cst_107 = arith.constant 0.000000e+00 : f32
    %192 = vector.broadcast %cst_107 : f32 to vector<8x128xf32>
    %193 = arith.select %191, %151, %192 : vector<8x128xi1>, vector<8x128xf32>
    %194 = arith.addf %186, %193 : vector<8x128xf32>
    %195 = arith.subf %154, %176 : vector<8x128xf32>
    %196 = math.exp %195 : vector<8x128xf32>
    %197 = arith.addf %189, %196 : vector<8x128xf32>
    %cst_108 = arith.constant 2.000000e+00 : f32
    %198 = vector.broadcast %cst_108 : f32 to vector<8x128xf32>
    %199 = arith.cmpf oeq, %31, %198 : vector<8x128xf32>
    %cst_109 = arith.constant 0.000000e+00 : f32
    %200 = vector.broadcast %cst_109 : f32 to vector<8x128xf32>
    %201 = arith.select %199, %154, %200 : vector<8x128xi1>, vector<8x128xf32>
    %202 = arith.addf %194, %201 : vector<8x128xf32>
    %203 = arith.subf %157, %176 : vector<8x128xf32>
    %204 = math.exp %203 : vector<8x128xf32>
    %205 = arith.addf %197, %204 : vector<8x128xf32>
    %cst_110 = arith.constant 3.000000e+00 : f32
    %206 = vector.broadcast %cst_110 : f32 to vector<8x128xf32>
    %207 = arith.cmpf oeq, %31, %206 : vector<8x128xf32>
    %cst_111 = arith.constant 0.000000e+00 : f32
    %208 = vector.broadcast %cst_111 : f32 to vector<8x128xf32>
    %209 = arith.select %207, %157, %208 : vector<8x128xi1>, vector<8x128xf32>
    %210 = arith.addf %202, %209 : vector<8x128xf32>
    %211 = arith.subf %160, %176 : vector<8x128xf32>
    %212 = math.exp %211 : vector<8x128xf32>
    %213 = arith.addf %205, %212 : vector<8x128xf32>
    %cst_112 = arith.constant 4.000000e+00 : f32
    %214 = vector.broadcast %cst_112 : f32 to vector<8x128xf32>
    %215 = arith.cmpf oeq, %31, %214 : vector<8x128xf32>
    %cst_113 = arith.constant 0.000000e+00 : f32
    %216 = vector.broadcast %cst_113 : f32 to vector<8x128xf32>
    %217 = arith.select %215, %160, %216 : vector<8x128xi1>, vector<8x128xf32>
    %218 = arith.addf %210, %217 : vector<8x128xf32>
    %219 = arith.subf %163, %176 : vector<8x128xf32>
    %220 = math.exp %219 : vector<8x128xf32>
    %221 = arith.addf %213, %220 : vector<8x128xf32>
    %cst_114 = arith.constant 5.000000e+00 : f32
    %222 = vector.broadcast %cst_114 : f32 to vector<8x128xf32>
    %223 = arith.cmpf oeq, %31, %222 : vector<8x128xf32>
    %cst_115 = arith.constant 0.000000e+00 : f32
    %224 = vector.broadcast %cst_115 : f32 to vector<8x128xf32>
    %225 = arith.select %223, %163, %224 : vector<8x128xi1>, vector<8x128xf32>
    %226 = arith.addf %218, %225 : vector<8x128xf32>
    %227 = arith.subf %166, %176 : vector<8x128xf32>
    %228 = math.exp %227 : vector<8x128xf32>
    %229 = arith.addf %221, %228 : vector<8x128xf32>
    %cst_116 = arith.constant 6.000000e+00 : f32
    %230 = vector.broadcast %cst_116 : f32 to vector<8x128xf32>
    %231 = arith.cmpf oeq, %31, %230 : vector<8x128xf32>
    %cst_117 = arith.constant 0.000000e+00 : f32
    %232 = vector.broadcast %cst_117 : f32 to vector<8x128xf32>
    %233 = arith.select %231, %166, %232 : vector<8x128xi1>, vector<8x128xf32>
    %234 = arith.addf %226, %233 : vector<8x128xf32>
    %235 = arith.subf %169, %176 : vector<8x128xf32>
    %236 = math.exp %235 : vector<8x128xf32>
    %237 = arith.addf %229, %236 : vector<8x128xf32>
    %cst_118 = arith.constant 7.000000e+00 : f32
    %238 = vector.broadcast %cst_118 : f32 to vector<8x128xf32>
    %239 = arith.cmpf oeq, %31, %238 : vector<8x128xf32>
    %cst_119 = arith.constant 0.000000e+00 : f32
    %240 = vector.broadcast %cst_119 : f32 to vector<8x128xf32>
    %241 = arith.select %239, %169, %240 : vector<8x128xi1>, vector<8x128xf32>
    %242 = arith.addf %234, %241 : vector<8x128xf32>
    %243 = math.log %237 : vector<8x128xf32>
    %244 = arith.addf %243, %176 : vector<8x128xf32>
    %245 = arith.subf %244, %242 : vector<8x128xf32>
    %246 = arith.mulf %245, %114 : vector<8x128xf32>
    %247 = arith.addf %10, %246 : vector<8x128xf32>
    %cst_120 = arith.constant 0.000000e+00 : f32
    %248 = vector.broadcast %cst_120 : f32 to vector<8x128xf32>
    %249 = arith.maximumf %15, %248 : vector<8x128xf32>
    %250 = arith.mulf %15, %33 : vector<8x128xf32>
    %251 = arith.subf %249, %250 : vector<8x128xf32>
    %252 = math.absf %15 : vector<8x128xf32>
    %cst_121 = arith.constant 0.000000e+00 : f32
    %253 = vector.broadcast %cst_121 : f32 to vector<8x128xf32>
    %254 = arith.subf %253, %252 : vector<8x128xf32>
    %255 = math.exp %254 : vector<8x128xf32>
    %cst_122 = arith.constant 1.000000e+00 : f32
    %256 = vector.broadcast %cst_122 : f32 to vector<8x128xf32>
    %257 = arith.addf %256, %255 : vector<8x128xf32>
    %258 = math.log %257 : vector<8x128xf32>
    %259 = arith.addf %251, %258 : vector<8x128xf32>
    %cst_123 = arith.constant 0.000000e+00 : f32
    %260 = vector.broadcast %cst_123 : f32 to vector<8x128xf32>
    %261 = arith.maximumf %18, %260 : vector<8x128xf32>
    %262 = arith.mulf %18, %35 : vector<8x128xf32>
    %263 = arith.subf %261, %262 : vector<8x128xf32>
    %264 = math.absf %18 : vector<8x128xf32>
    %cst_124 = arith.constant 0.000000e+00 : f32
    %265 = vector.broadcast %cst_124 : f32 to vector<8x128xf32>
    %266 = arith.subf %265, %264 : vector<8x128xf32>
    %267 = math.exp %266 : vector<8x128xf32>
    %cst_125 = arith.constant 1.000000e+00 : f32
    %268 = vector.broadcast %cst_125 : f32 to vector<8x128xf32>
    %269 = arith.addf %268, %267 : vector<8x128xf32>
    %270 = math.log %269 : vector<8x128xf32>
    %271 = arith.addf %263, %270 : vector<8x128xf32>
    %272 = arith.addf %259, %271 : vector<8x128xf32>
    %273 = arith.subf %21, %37 : vector<8x128xf32>
    %274 = arith.mulf %273, %273 : vector<8x128xf32>
    %275 = arith.subf %24, %39 : vector<8x128xf32>
    %276 = arith.mulf %275, %275 : vector<8x128xf32>
    %277 = arith.addf %274, %276 : vector<8x128xf32>
    %278 = arith.addf %272, %277 : vector<8x128xf32>
    %279 = arith.mulf %41, %114 : vector<8x128xf32>
    %280 = arith.mulf %278, %279 : vector<8x128xf32>
    %281 = arith.addf %11, %280 : vector<8x128xf32>
    %282 = arith.subf %109, %114 : vector<8x128xf32>
    %283 = math.absf %282 : vector<8x128xf32>
    %cst_126 = arith.constant 1.000000e+00 : f32
    %284 = vector.broadcast %cst_126 : f32 to vector<8x128xf32>
    %285 = arith.cmpf olt, %283, %284 : vector<8x128xf32>
    %cst_127 = arith.constant 5.000000e-01 : f32
    %286 = vector.broadcast %cst_127 : f32 to vector<8x128xf32>
    %287 = arith.mulf %286, %282 : vector<8x128xf32>
    %288 = arith.mulf %287, %282 : vector<8x128xf32>
    %cst_128 = arith.constant 5.000000e-01 : f32
    %289 = vector.broadcast %cst_128 : f32 to vector<8x128xf32>
    %290 = arith.subf %283, %289 : vector<8x128xf32>
    %291 = arith.select %285, %288, %290 : vector<8x128xi1>, vector<8x128xf32>
    %292 = arith.mulf %291, %114 : vector<8x128xf32>
    %293 = arith.addf %12, %292 : vector<8x128xf32>
    %c13 = arith.constant 13 : index
    %c0_129 = arith.constant 0 : index
    %c0_130 = arith.constant 0 : index
    %294 = vector.load %arg2[%c13, %c0_129, %c0_130] : memref<26x8x128xbf16, #tpu.memory_space<vmem>>, vector<1x8x128xbf16>
    %295 = vector.shape_cast %294 : vector<1x8x128xbf16> to vector<8x128xbf16>
    %296 = arith.extf %295 : vector<8x128xbf16> to vector<8x128xf32>
    %c14 = arith.constant 14 : index
    %c0_131 = arith.constant 0 : index
    %c0_132 = arith.constant 0 : index
    %297 = vector.load %arg2[%c14, %c0_131, %c0_132] : memref<26x8x128xbf16, #tpu.memory_space<vmem>>, vector<1x8x128xbf16>
    %298 = vector.shape_cast %297 : vector<1x8x128xbf16> to vector<8x128xbf16>
    %299 = arith.extf %298 : vector<8x128xbf16> to vector<8x128xf32>
    %c15 = arith.constant 15 : index
    %c0_133 = arith.constant 0 : index
    %c0_134 = arith.constant 0 : index
    %300 = vector.load %arg2[%c15, %c0_133, %c0_134] : memref<26x8x128xbf16, #tpu.memory_space<vmem>>, vector<1x8x128xbf16>
    %301 = vector.shape_cast %300 : vector<1x8x128xbf16> to vector<8x128xbf16>
    %302 = arith.extf %301 : vector<8x128xbf16> to vector<8x128xf32>
    %c16 = arith.constant 16 : index
    %c0_135 = arith.constant 0 : index
    %c0_136 = arith.constant 0 : index
    %303 = vector.load %arg2[%c16, %c0_135, %c0_136] : memref<26x8x128xbf16, #tpu.memory_space<vmem>>, vector<1x8x128xbf16>
    %304 = vector.shape_cast %303 : vector<1x8x128xbf16> to vector<8x128xbf16>
    %305 = arith.extf %304 : vector<8x128xbf16> to vector<8x128xf32>
    %c17 = arith.constant 17 : index
    %c0_137 = arith.constant 0 : index
    %c0_138 = arith.constant 0 : index
    %306 = vector.load %arg2[%c17, %c0_137, %c0_138] : memref<26x8x128xbf16, #tpu.memory_space<vmem>>, vector<1x8x128xbf16>
    %307 = vector.shape_cast %306 : vector<1x8x128xbf16> to vector<8x128xbf16>
    %308 = arith.extf %307 : vector<8x128xbf16> to vector<8x128xf32>
    %c11_139 = arith.constant 11 : index
    %c0_140 = arith.constant 0 : index
    %c0_141 = arith.constant 0 : index
    %309 = vector.load %arg3[%c11_139, %c0_140, %c0_141] : memref<22x8x128xf32, #tpu.memory_space<vmem>>, vector<1x8x128xf32>
    %310 = vector.shape_cast %309 : vector<1x8x128xf32> to vector<8x128xf32>
    %c12_142 = arith.constant 12 : index
    %c0_143 = arith.constant 0 : index
    %c0_144 = arith.constant 0 : index
    %311 = vector.load %arg3[%c12_142, %c0_143, %c0_144] : memref<22x8x128xf32, #tpu.memory_space<vmem>>, vector<1x8x128xf32>
    %312 = vector.shape_cast %311 : vector<1x8x128xf32> to vector<8x128xf32>
    %c13_145 = arith.constant 13 : index
    %c0_146 = arith.constant 0 : index
    %c0_147 = arith.constant 0 : index
    %313 = vector.load %arg3[%c13_145, %c0_146, %c0_147] : memref<22x8x128xf32, #tpu.memory_space<vmem>>, vector<1x8x128xf32>
    %314 = vector.shape_cast %313 : vector<1x8x128xf32> to vector<8x128xf32>
    %c14_148 = arith.constant 14 : index
    %c0_149 = arith.constant 0 : index
    %c0_150 = arith.constant 0 : index
    %315 = vector.load %arg3[%c14_148, %c0_149, %c0_150] : memref<22x8x128xf32, #tpu.memory_space<vmem>>, vector<1x8x128xf32>
    %316 = vector.shape_cast %315 : vector<1x8x128xf32> to vector<8x128xf32>
    %c15_151 = arith.constant 15 : index
    %c0_152 = arith.constant 0 : index
    %c0_153 = arith.constant 0 : index
    %317 = vector.load %arg3[%c15_151, %c0_152, %c0_153] : memref<22x8x128xf32, #tpu.memory_space<vmem>>, vector<1x8x128xf32>
    %318 = vector.shape_cast %317 : vector<1x8x128xf32> to vector<8x128xf32>
    %c16_154 = arith.constant 16 : index
    %c0_155 = arith.constant 0 : index
    %c0_156 = arith.constant 0 : index
    %319 = vector.load %arg3[%c16_154, %c0_155, %c0_156] : memref<22x8x128xf32, #tpu.memory_space<vmem>>, vector<1x8x128xf32>
    %320 = vector.shape_cast %319 : vector<1x8x128xf32> to vector<8x128xf32>
    %c17_157 = arith.constant 17 : index
    %c0_158 = arith.constant 0 : index
    %c0_159 = arith.constant 0 : index
    %321 = vector.load %arg3[%c17_157, %c0_158, %c0_159] : memref<22x8x128xf32, #tpu.memory_space<vmem>>, vector<1x8x128xf32>
    %322 = vector.shape_cast %321 : vector<1x8x128xf32> to vector<8x128xf32>
    %c18 = arith.constant 18 : index
    %c0_160 = arith.constant 0 : index
    %c0_161 = arith.constant 0 : index
    %323 = vector.load %arg3[%c18, %c0_160, %c0_161] : memref<22x8x128xf32, #tpu.memory_space<vmem>>, vector<1x8x128xf32>
    %324 = vector.shape_cast %323 : vector<1x8x128xf32> to vector<8x128xf32>
    %c19 = arith.constant 19 : index
    %c0_162 = arith.constant 0 : index
    %c0_163 = arith.constant 0 : index
    %325 = vector.load %arg3[%c19, %c0_162, %c0_163] : memref<22x8x128xf32, #tpu.memory_space<vmem>>, vector<1x8x128xf32>
    %326 = vector.shape_cast %325 : vector<1x8x128xf32> to vector<8x128xf32>
    %c20 = arith.constant 20 : index
    %c0_164 = arith.constant 0 : index
    %c0_165 = arith.constant 0 : index
    %327 = vector.load %arg3[%c20, %c0_164, %c0_165] : memref<22x8x128xf32, #tpu.memory_space<vmem>>, vector<1x8x128xf32>
    %328 = vector.shape_cast %327 : vector<1x8x128xf32> to vector<8x128xf32>
    %c21 = arith.constant 21 : index
    %c0_166 = arith.constant 0 : index
    %c0_167 = arith.constant 0 : index
    %329 = vector.load %arg3[%c21, %c0_166, %c0_167] : memref<22x8x128xf32, #tpu.memory_space<vmem>>, vector<1x8x128xf32>
    %330 = vector.shape_cast %329 : vector<1x8x128xf32> to vector<8x128xf32>
    %cst_168 = arith.constant 5.000000e-01 : f32
    %331 = vector.broadcast %cst_168 : f32 to vector<8x128xf32>
    %332 = arith.mulf %331, %296 : vector<8x128xf32>
    %333 = math.tanh %332 : vector<8x128xf32>
    %cst_169 = arith.constant 1.000000e+00 : f32
    %334 = vector.broadcast %cst_169 : f32 to vector<8x128xf32>
    %335 = arith.addf %333, %334 : vector<8x128xf32>
    %cst_170 = arith.constant 5.000000e-01 : f32
    %336 = vector.broadcast %cst_170 : f32 to vector<8x128xf32>
    %337 = arith.mulf %336, %335 : vector<8x128xf32>
    %cst_171 = arith.constant 6.250000e-02 : f32
    %338 = vector.broadcast %cst_171 : f32 to vector<8x128xf32>
    %339 = arith.mulf %337, %338 : vector<8x128xf32>
    %340 = arith.addf %339, %4 : vector<8x128xf32>
    %cst_172 = arith.constant 5.000000e-01 : f32
    %341 = vector.broadcast %cst_172 : f32 to vector<8x128xf32>
    %342 = arith.mulf %341, %299 : vector<8x128xf32>
    %343 = math.tanh %342 : vector<8x128xf32>
    %cst_173 = arith.constant 1.000000e+00 : f32
    %344 = vector.broadcast %cst_173 : f32 to vector<8x128xf32>
    %345 = arith.addf %343, %344 : vector<8x128xf32>
    %cst_174 = arith.constant 5.000000e-01 : f32
    %346 = vector.broadcast %cst_174 : f32 to vector<8x128xf32>
    %347 = arith.mulf %346, %345 : vector<8x128xf32>
    %cst_175 = arith.constant 6.250000e-02 : f32
    %348 = vector.broadcast %cst_175 : f32 to vector<8x128xf32>
    %349 = arith.mulf %347, %348 : vector<8x128xf32>
    %350 = arith.addf %349, %6 : vector<8x128xf32>
    %351 = math.exp %302 : vector<8x128xf32>
    %cst_176 = arith.constant 1.562500e-01 : f32
    %352 = vector.broadcast %cst_176 : f32 to vector<8x128xf32>
    %353 = arith.mulf %351, %352 : vector<8x128xf32>
    %354 = math.exp %305 : vector<8x128xf32>
    %cst_177 = arith.constant 1.875000e-01 : f32
    %355 = vector.broadcast %cst_177 : f32 to vector<8x128xf32>
    %356 = arith.mulf %354, %355 : vector<8x128xf32>
    %cst_178 = arith.constant 5.000000e-01 : f32
    %357 = vector.broadcast %cst_178 : f32 to vector<8x128xf32>
    %358 = arith.mulf %357, %353 : vector<8x128xf32>
    %cst_179 = arith.constant 5.000000e-01 : f32
    %359 = vector.broadcast %cst_179 : f32 to vector<8x128xf32>
    %360 = arith.mulf %359, %356 : vector<8x128xf32>
    %361 = arith.subf %340, %358 : vector<8x128xf32>
    %362 = arith.addf %340, %358 : vector<8x128xf32>
    %363 = arith.subf %350, %360 : vector<8x128xf32>
    %364 = arith.addf %350, %360 : vector<8x128xf32>
    %365 = arith.maximumf %361, %324 : vector<8x128xf32>
    %366 = arith.maximumf %363, %326 : vector<8x128xf32>
    %367 = arith.minimumf %362, %328 : vector<8x128xf32>
    %368 = arith.minimumf %364, %330 : vector<8x128xf32>
    %369 = arith.mulf %353, %356 : vector<8x128xf32>
    %370 = arith.subf %328, %324 : vector<8x128xf32>
    %371 = arith.subf %330, %326 : vector<8x128xf32>
    %372 = arith.mulf %370, %371 : vector<8x128xf32>
    %373 = arith.cmpf olt, %365, %367 : vector<8x128xf32>
    %374 = arith.cmpf olt, %366, %368 : vector<8x128xf32>
    %375 = arith.andi %373, %374 : vector<8x128xi1>
    %cst_180 = arith.constant 1.000000e+00 : f32
    %cst_181 = arith.constant 0.000000e+00 : f32
    %376 = vector.broadcast %cst_180 : f32 to vector<8x128xf32>
    %377 = vector.broadcast %cst_181 : f32 to vector<8x128xf32>
    %378 = arith.select %375, %376, %377 : vector<8x128xi1>, vector<8x128xf32>
    %379 = arith.subf %367, %365 : vector<8x128xf32>
    %380 = arith.subf %368, %366 : vector<8x128xf32>
    %381 = arith.mulf %379, %380 : vector<8x128xf32>
    %382 = arith.mulf %381, %378 : vector<8x128xf32>
    %383 = arith.addf %369, %372 : vector<8x128xf32>
    %384 = arith.subf %383, %382 : vector<8x128xf32>
    %385 = tpu.reciprocal %384 {approx = true} : vector<8x128xf32> -> vector<8x128xf32>
    %386 = arith.mulf %384, %385 : vector<8x128xf32>
    %cst_182 = arith.constant 2.000000e+00 : f32
    %387 = vector.broadcast %cst_182 : f32 to vector<8x128xf32>
    %388 = arith.subf %387, %386 : vector<8x128xf32>
    %389 = arith.mulf %385, %388 : vector<8x128xf32>
    %390 = arith.mulf %382, %389 : vector<8x128xf32>
    %cst_183 = arith.constant 0.000000e+00 : f32
    %391 = vector.broadcast %cst_183 : f32 to vector<8x128xf32>
    %392 = arith.cmpf ogt, %322, %391 : vector<8x128xf32>
    %cst_184 = arith.constant 1.000000e+00 : f32
    %cst_185 = arith.constant 0.000000e+00 : f32
    %393 = vector.broadcast %cst_184 : f32 to vector<8x128xf32>
    %394 = vector.broadcast %cst_185 : f32 to vector<8x128xf32>
    %395 = arith.select %392, %393, %394 : vector<8x128xi1>, vector<8x128xf32>
    %cst_186 = arith.constant 5.000000e-01 : f32
    %396 = vector.broadcast %cst_186 : f32 to vector<8x128xf32>
    %397 = arith.mulf %396, %308 : vector<8x128xf32>
    %398 = math.tanh %397 : vector<8x128xf32>
    %cst_187 = arith.constant 1.000000e+00 : f32
    %399 = vector.broadcast %cst_187 : f32 to vector<8x128xf32>
    %400 = arith.addf %398, %399 : vector<8x128xf32>
    %cst_188 = arith.constant 5.000000e-01 : f32
    %401 = vector.broadcast %cst_188 : f32 to vector<8x128xf32>
    %402 = arith.mulf %401, %400 : vector<8x128xf32>
    %cst_189 = arith.constant 9.99999974E-5 : f32
    %cst_190 = arith.constant 0.999899983 : f32
    %403 = vector.broadcast %cst_189 : f32 to vector<8x128xf32>
    %404 = arith.maximumf %403, %402 : vector<8x128xf32>
    %405 = vector.broadcast %cst_190 : f32 to vector<8x128xf32>
    %406 = arith.minimumf %405, %404 : vector<8x128xf32>
    %cst_191 = arith.constant 1.000000e+00 : f32
    %407 = vector.broadcast %cst_191 : f32 to vector<8x128xf32>
    %408 = arith.cmpf oeq, %310, %407 : vector<8x128xf32>
    %cst_192 = arith.constant 1.000000e+00 : f32
    %cst_193 = arith.constant 0.000000e+00 : f32
    %409 = vector.broadcast %cst_192 : f32 to vector<8x128xf32>
    %410 = vector.broadcast %cst_193 : f32 to vector<8x128xf32>
    %411 = arith.select %408, %409, %410 : vector<8x128xi1>, vector<8x128xf32>
    %cst_194 = arith.constant 0.000000e+00 : f32
    %412 = vector.broadcast %cst_194 : f32 to vector<8x128xf32>
    %413 = arith.cmpf oeq, %310, %412 : vector<8x128xf32>
    %cst_195 = arith.constant 1.000000e+00 : f32
    %cst_196 = arith.constant 0.000000e+00 : f32
    %414 = vector.broadcast %cst_195 : f32 to vector<8x128xf32>
    %415 = vector.broadcast %cst_196 : f32 to vector<8x128xf32>
    %416 = arith.select %413, %414, %415 : vector<8x128xi1>, vector<8x128xf32>
    %cst_197 = arith.constant 5.000000e+00 : f32
    %417 = vector.broadcast %cst_197 : f32 to vector<8x128xf32>
    %418 = arith.mulf %417, %411 : vector<8x128xf32>
    %419 = arith.subf %406, %390 : vector<8x128xf32>
    %420 = arith.mulf %419, %419 : vector<8x128xf32>
    %421 = arith.mulf %418, %420 : vector<8x128xf32>
    %422 = arith.mulf %416, %8 : vector<8x128xf32>
    %423 = arith.mulf %406, %406 : vector<8x128xf32>
    %424 = arith.mulf %422, %423 : vector<8x128xf32>
    %425 = arith.addf %421, %424 : vector<8x128xf32>
    %426 = arith.addf %145, %425 : vector<8x128xf32>
    %c18_198 = arith.constant 18 : index
    %c0_199 = arith.constant 0 : index
    %c0_200 = arith.constant 0 : index
    %427 = vector.load %arg2[%c18_198, %c0_199, %c0_200] : memref<26x8x128xbf16, #tpu.memory_space<vmem>>, vector<1x8x128xbf16>
    %428 = vector.shape_cast %427 : vector<1x8x128xbf16> to vector<8x128xbf16>
    %429 = arith.extf %428 : vector<8x128xbf16> to vector<8x128xf32>
    %c19_201 = arith.constant 19 : index
    %c0_202 = arith.constant 0 : index
    %c0_203 = arith.constant 0 : index
    %430 = vector.load %arg2[%c19_201, %c0_202, %c0_203] : memref<26x8x128xbf16, #tpu.memory_space<vmem>>, vector<1x8x128xbf16>
    %431 = vector.shape_cast %430 : vector<1x8x128xbf16> to vector<8x128xbf16>
    %432 = arith.extf %431 : vector<8x128xbf16> to vector<8x128xf32>
    %c20_204 = arith.constant 20 : index
    %c0_205 = arith.constant 0 : index
    %c0_206 = arith.constant 0 : index
    %433 = vector.load %arg2[%c20_204, %c0_205, %c0_206] : memref<26x8x128xbf16, #tpu.memory_space<vmem>>, vector<1x8x128xbf16>
    %434 = vector.shape_cast %433 : vector<1x8x128xbf16> to vector<8x128xbf16>
    %435 = arith.extf %434 : vector<8x128xbf16> to vector<8x128xf32>
    %c21_207 = arith.constant 21 : index
    %c0_208 = arith.constant 0 : index
    %c0_209 = arith.constant 0 : index
    %436 = vector.load %arg2[%c21_207, %c0_208, %c0_209] : memref<26x8x128xbf16, #tpu.memory_space<vmem>>, vector<1x8x128xbf16>
    %437 = vector.shape_cast %436 : vector<1x8x128xbf16> to vector<8x128xbf16>
    %438 = arith.extf %437 : vector<8x128xbf16> to vector<8x128xf32>
    %c22 = arith.constant 22 : index
    %c0_210 = arith.constant 0 : index
    %c0_211 = arith.constant 0 : index
    %439 = vector.load %arg2[%c22, %c0_210, %c0_211] : memref<26x8x128xbf16, #tpu.memory_space<vmem>>, vector<1x8x128xbf16>
    %440 = vector.shape_cast %439 : vector<1x8x128xbf16> to vector<8x128xbf16>
    %441 = arith.extf %440 : vector<8x128xbf16> to vector<8x128xf32>
    %c23 = arith.constant 23 : index
    %c0_212 = arith.constant 0 : index
    %c0_213 = arith.constant 0 : index
    %442 = vector.load %arg2[%c23, %c0_212, %c0_213] : memref<26x8x128xbf16, #tpu.memory_space<vmem>>, vector<1x8x128xbf16>
    %443 = vector.shape_cast %442 : vector<1x8x128xbf16> to vector<8x128xbf16>
    %444 = arith.extf %443 : vector<8x128xbf16> to vector<8x128xf32>
    %c24 = arith.constant 24 : index
    %c0_214 = arith.constant 0 : index
    %c0_215 = arith.constant 0 : index
    %445 = vector.load %arg2[%c24, %c0_214, %c0_215] : memref<26x8x128xbf16, #tpu.memory_space<vmem>>, vector<1x8x128xbf16>
    %446 = vector.shape_cast %445 : vector<1x8x128xbf16> to vector<8x128xbf16>
    %447 = arith.extf %446 : vector<8x128xbf16> to vector<8x128xf32>
    %c25 = arith.constant 25 : index
    %c0_216 = arith.constant 0 : index
    %c0_217 = arith.constant 0 : index
    %448 = vector.load %arg2[%c25, %c0_216, %c0_217] : memref<26x8x128xbf16, #tpu.memory_space<vmem>>, vector<1x8x128xbf16>
    %449 = vector.shape_cast %448 : vector<1x8x128xbf16> to vector<8x128xbf16>
    %450 = arith.extf %449 : vector<8x128xbf16> to vector<8x128xf32>
    %451 = arith.maximumf %429, %432 : vector<8x128xf32>
    %452 = arith.maximumf %451, %435 : vector<8x128xf32>
    %453 = arith.maximumf %452, %438 : vector<8x128xf32>
    %454 = arith.maximumf %453, %441 : vector<8x128xf32>
    %455 = arith.maximumf %454, %444 : vector<8x128xf32>
    %456 = arith.maximumf %455, %447 : vector<8x128xf32>
    %457 = arith.maximumf %456, %450 : vector<8x128xf32>
    %cst_218 = arith.constant 0.000000e+00 : f32
    %458 = vector.broadcast %cst_218 : f32 to vector<8x128xf32>
    %cst_219 = arith.constant 0.000000e+00 : f32
    %459 = vector.broadcast %cst_219 : f32 to vector<8x128xf32>
    %460 = arith.subf %429, %457 : vector<8x128xf32>
    %461 = math.exp %460 : vector<8x128xf32>
    %462 = arith.addf %458, %461 : vector<8x128xf32>
    %cst_220 = arith.constant 0.000000e+00 : f32
    %463 = vector.broadcast %cst_220 : f32 to vector<8x128xf32>
    %464 = arith.cmpf oeq, %312, %463 : vector<8x128xf32>
    %cst_221 = arith.constant 0.000000e+00 : f32
    %465 = vector.broadcast %cst_221 : f32 to vector<8x128xf32>
    %466 = arith.select %464, %429, %465 : vector<8x128xi1>, vector<8x128xf32>
    %467 = arith.addf %459, %466 : vector<8x128xf32>
    %468 = arith.subf %432, %457 : vector<8x128xf32>
    %469 = math.exp %468 : vector<8x128xf32>
    %470 = arith.addf %462, %469 : vector<8x128xf32>
    %cst_222 = arith.constant 1.000000e+00 : f32
    %471 = vector.broadcast %cst_222 : f32 to vector<8x128xf32>
    %472 = arith.cmpf oeq, %312, %471 : vector<8x128xf32>
    %cst_223 = arith.constant 0.000000e+00 : f32
    %473 = vector.broadcast %cst_223 : f32 to vector<8x128xf32>
    %474 = arith.select %472, %432, %473 : vector<8x128xi1>, vector<8x128xf32>
    %475 = arith.addf %467, %474 : vector<8x128xf32>
    %476 = arith.subf %435, %457 : vector<8x128xf32>
    %477 = math.exp %476 : vector<8x128xf32>
    %478 = arith.addf %470, %477 : vector<8x128xf32>
    %cst_224 = arith.constant 2.000000e+00 : f32
    %479 = vector.broadcast %cst_224 : f32 to vector<8x128xf32>
    %480 = arith.cmpf oeq, %312, %479 : vector<8x128xf32>
    %cst_225 = arith.constant 0.000000e+00 : f32
    %481 = vector.broadcast %cst_225 : f32 to vector<8x128xf32>
    %482 = arith.select %480, %435, %481 : vector<8x128xi1>, vector<8x128xf32>
    %483 = arith.addf %475, %482 : vector<8x128xf32>
    %484 = arith.subf %438, %457 : vector<8x128xf32>
    %485 = math.exp %484 : vector<8x128xf32>
    %486 = arith.addf %478, %485 : vector<8x128xf32>
    %cst_226 = arith.constant 3.000000e+00 : f32
    %487 = vector.broadcast %cst_226 : f32 to vector<8x128xf32>
    %488 = arith.cmpf oeq, %312, %487 : vector<8x128xf32>
    %cst_227 = arith.constant 0.000000e+00 : f32
    %489 = vector.broadcast %cst_227 : f32 to vector<8x128xf32>
    %490 = arith.select %488, %438, %489 : vector<8x128xi1>, vector<8x128xf32>
    %491 = arith.addf %483, %490 : vector<8x128xf32>
    %492 = arith.subf %441, %457 : vector<8x128xf32>
    %493 = math.exp %492 : vector<8x128xf32>
    %494 = arith.addf %486, %493 : vector<8x128xf32>
    %cst_228 = arith.constant 4.000000e+00 : f32
    %495 = vector.broadcast %cst_228 : f32 to vector<8x128xf32>
    %496 = arith.cmpf oeq, %312, %495 : vector<8x128xf32>
    %cst_229 = arith.constant 0.000000e+00 : f32
    %497 = vector.broadcast %cst_229 : f32 to vector<8x128xf32>
    %498 = arith.select %496, %441, %497 : vector<8x128xi1>, vector<8x128xf32>
    %499 = arith.addf %491, %498 : vector<8x128xf32>
    %500 = arith.subf %444, %457 : vector<8x128xf32>
    %501 = math.exp %500 : vector<8x128xf32>
    %502 = arith.addf %494, %501 : vector<8x128xf32>
    %cst_230 = arith.constant 5.000000e+00 : f32
    %503 = vector.broadcast %cst_230 : f32 to vector<8x128xf32>
    %504 = arith.cmpf oeq, %312, %503 : vector<8x128xf32>
    %cst_231 = arith.constant 0.000000e+00 : f32
    %505 = vector.broadcast %cst_231 : f32 to vector<8x128xf32>
    %506 = arith.select %504, %444, %505 : vector<8x128xi1>, vector<8x128xf32>
    %507 = arith.addf %499, %506 : vector<8x128xf32>
    %508 = arith.subf %447, %457 : vector<8x128xf32>
    %509 = math.exp %508 : vector<8x128xf32>
    %510 = arith.addf %502, %509 : vector<8x128xf32>
    %cst_232 = arith.constant 6.000000e+00 : f32
    %511 = vector.broadcast %cst_232 : f32 to vector<8x128xf32>
    %512 = arith.cmpf oeq, %312, %511 : vector<8x128xf32>
    %cst_233 = arith.constant 0.000000e+00 : f32
    %513 = vector.broadcast %cst_233 : f32 to vector<8x128xf32>
    %514 = arith.select %512, %447, %513 : vector<8x128xi1>, vector<8x128xf32>
    %515 = arith.addf %507, %514 : vector<8x128xf32>
    %516 = arith.subf %450, %457 : vector<8x128xf32>
    %517 = math.exp %516 : vector<8x128xf32>
    %518 = arith.addf %510, %517 : vector<8x128xf32>
    %cst_234 = arith.constant 7.000000e+00 : f32
    %519 = vector.broadcast %cst_234 : f32 to vector<8x128xf32>
    %520 = arith.cmpf oeq, %312, %519 : vector<8x128xf32>
    %cst_235 = arith.constant 0.000000e+00 : f32
    %521 = vector.broadcast %cst_235 : f32 to vector<8x128xf32>
    %522 = arith.select %520, %450, %521 : vector<8x128xi1>, vector<8x128xf32>
    %523 = arith.addf %515, %522 : vector<8x128xf32>
    %524 = math.log %518 : vector<8x128xf32>
    %525 = arith.addf %524, %457 : vector<8x128xf32>
    %526 = arith.subf %525, %523 : vector<8x128xf32>
    %527 = arith.mulf %526, %395 : vector<8x128xf32>
    %528 = arith.addf %247, %527 : vector<8x128xf32>
    %cst_236 = arith.constant 0.000000e+00 : f32
    %529 = vector.broadcast %cst_236 : f32 to vector<8x128xf32>
    %530 = arith.maximumf %296, %529 : vector<8x128xf32>
    %531 = arith.mulf %296, %314 : vector<8x128xf32>
    %532 = arith.subf %530, %531 : vector<8x128xf32>
    %533 = math.absf %296 : vector<8x128xf32>
    %cst_237 = arith.constant 0.000000e+00 : f32
    %534 = vector.broadcast %cst_237 : f32 to vector<8x128xf32>
    %535 = arith.subf %534, %533 : vector<8x128xf32>
    %536 = math.exp %535 : vector<8x128xf32>
    %cst_238 = arith.constant 1.000000e+00 : f32
    %537 = vector.broadcast %cst_238 : f32 to vector<8x128xf32>
    %538 = arith.addf %537, %536 : vector<8x128xf32>
    %539 = math.log %538 : vector<8x128xf32>
    %540 = arith.addf %532, %539 : vector<8x128xf32>
    %cst_239 = arith.constant 0.000000e+00 : f32
    %541 = vector.broadcast %cst_239 : f32 to vector<8x128xf32>
    %542 = arith.maximumf %299, %541 : vector<8x128xf32>
    %543 = arith.mulf %299, %316 : vector<8x128xf32>
    %544 = arith.subf %542, %543 : vector<8x128xf32>
    %545 = math.absf %299 : vector<8x128xf32>
    %cst_240 = arith.constant 0.000000e+00 : f32
    %546 = vector.broadcast %cst_240 : f32 to vector<8x128xf32>
    %547 = arith.subf %546, %545 : vector<8x128xf32>
    %548 = math.exp %547 : vector<8x128xf32>
    %cst_241 = arith.constant 1.000000e+00 : f32
    %549 = vector.broadcast %cst_241 : f32 to vector<8x128xf32>
    %550 = arith.addf %549, %548 : vector<8x128xf32>
    %551 = math.log %550 : vector<8x128xf32>
    %552 = arith.addf %544, %551 : vector<8x128xf32>
    %553 = arith.addf %540, %552 : vector<8x128xf32>
    %554 = arith.subf %302, %318 : vector<8x128xf32>
    %555 = arith.mulf %554, %554 : vector<8x128xf32>
    %556 = arith.subf %305, %320 : vector<8x128xf32>
    %557 = arith.mulf %556, %556 : vector<8x128xf32>
    %558 = arith.addf %555, %557 : vector<8x128xf32>
    %559 = arith.addf %553, %558 : vector<8x128xf32>
    %560 = arith.mulf %322, %395 : vector<8x128xf32>
    %561 = arith.mulf %559, %560 : vector<8x128xf32>
    %562 = arith.addf %281, %561 : vector<8x128xf32>
    %563 = arith.subf %390, %395 : vector<8x128xf32>
    %564 = math.absf %563 : vector<8x128xf32>
    %cst_242 = arith.constant 1.000000e+00 : f32
    %565 = vector.broadcast %cst_242 : f32 to vector<8x128xf32>
    %566 = arith.cmpf olt, %564, %565 : vector<8x128xf32>
    %cst_243 = arith.constant 5.000000e-01 : f32
    %567 = vector.broadcast %cst_243 : f32 to vector<8x128xf32>
    %568 = arith.mulf %567, %563 : vector<8x128xf32>
    %569 = arith.mulf %568, %563 : vector<8x128xf32>
    %cst_244 = arith.constant 5.000000e-01 : f32
    %570 = vector.broadcast %cst_244 : f32 to vector<8x128xf32>
    %571 = arith.subf %564, %570 : vector<8x128xf32>
    %572 = arith.select %566, %569, %571 : vector<8x128xi1>, vector<8x128xf32>
    %573 = arith.mulf %572, %395 : vector<8x128xf32>
    %574 = arith.addf %293, %573 : vector<8x128xf32>
    %c0_245 = arith.constant 0 : index
    %c0_246 = arith.constant 0 : index
    %c0_247 = arith.constant 0 : index
    %c0_248 = arith.constant 0 : index
    %575 = vector.load %arg5[%c0_245, %c0_246, %c0_247, %c0_248] : memref<1x4x8x128xf32, #tpu.memory_space<vmem>>, vector<1x1x8x128xf32>
    %576 = vector.shape_cast %575 : vector<1x1x8x128xf32> to vector<8x128xf32>
    %577 = arith.addf %576, %426 : vector<8x128xf32>
    %c0_249 = arith.constant 0 : index
    %c0_250 = arith.constant 0 : index
    %c0_251 = arith.constant 0 : index
    %c0_252 = arith.constant 0 : index
    %578 = vector.load %arg5[%c0_249, %c0_250, %c0_251, %c0_252] : memref<1x4x8x128xf32, #tpu.memory_space<vmem>>, vector<1x1x8x128xf32>
    %579 = vector.shape_cast %578 : vector<1x1x8x128xf32> to vector<8x128xf32>
    %580 = vector.shape_cast %577 : vector<8x128xf32> to vector<1x1x8x128xf32>
    tpu.vector_store %arg5[%c0_249, %c0_250, %c0_251, %c0_252], %580 {strides = array<i32>} : memref<1x4x8x128xf32, #tpu.memory_space<vmem>>, vector<1x1x8x128xf32>,
    %c0_253 = arith.constant 0 : index
    %c1_254 = arith.constant 1 : index
    %c0_255 = arith.constant 0 : index
    %c0_256 = arith.constant 0 : index
    %581 = vector.load %arg5[%c0_253, %c1_254, %c0_255, %c0_256] : memref<1x4x8x128xf32, #tpu.memory_space<vmem>>, vector<1x1x8x128xf32>
    %582 = vector.shape_cast %581 : vector<1x1x8x128xf32> to vector<8x128xf32>
    %583 = arith.addf %582, %528 : vector<8x128xf32>
    %c0_257 = arith.constant 0 : index
    %c1_258 = arith.constant 1 : index
    %c0_259 = arith.constant 0 : index
    %c0_260 = arith.constant 0 : index
    %584 = vector.load %arg5[%c0_257, %c1_258, %c0_259, %c0_260] : memref<1x4x8x128xf32, #tpu.memory_space<vmem>>, vector<1x1x8x128xf32>
    %585 = vector.shape_cast %584 : vector<1x1x8x128xf32> to vector<8x128xf32>
    %586 = vector.shape_cast %583 : vector<8x128xf32> to vector<1x1x8x128xf32>
    tpu.vector_store %arg5[%c0_257, %c1_258, %c0_259, %c0_260], %586 {strides = array<i32>} : memref<1x4x8x128xf32, #tpu.memory_space<vmem>>, vector<1x1x8x128xf32>,
    %c0_261 = arith.constant 0 : index
    %c2_262 = arith.constant 2 : index
    %c0_263 = arith.constant 0 : index
    %c0_264 = arith.constant 0 : index
    %587 = vector.load %arg5[%c0_261, %c2_262, %c0_263, %c0_264] : memref<1x4x8x128xf32, #tpu.memory_space<vmem>>, vector<1x1x8x128xf32>
    %588 = vector.shape_cast %587 : vector<1x1x8x128xf32> to vector<8x128xf32>
    %589 = arith.addf %588, %562 : vector<8x128xf32>
    %c0_265 = arith.constant 0 : index
    %c2_266 = arith.constant 2 : index
    %c0_267 = arith.constant 0 : index
    %c0_268 = arith.constant 0 : index
    %590 = vector.load %arg5[%c0_265, %c2_266, %c0_267, %c0_268] : memref<1x4x8x128xf32, #tpu.memory_space<vmem>>, vector<1x1x8x128xf32>
    %591 = vector.shape_cast %590 : vector<1x1x8x128xf32> to vector<8x128xf32>
    %592 = vector.shape_cast %589 : vector<8x128xf32> to vector<1x1x8x128xf32>
    tpu.vector_store %arg5[%c0_265, %c2_266, %c0_267, %c0_268], %592 {strides = array<i32>} : memref<1x4x8x128xf32, #tpu.memory_space<vmem>>, vector<1x1x8x128xf32>,
    %c0_269 = arith.constant 0 : index
    %c3_270 = arith.constant 3 : index
    %c0_271 = arith.constant 0 : index
    %c0_272 = arith.constant 0 : index
    %593 = vector.load %arg5[%c0_269, %c3_270, %c0_271, %c0_272] : memref<1x4x8x128xf32, #tpu.memory_space<vmem>>, vector<1x1x8x128xf32>
    %594 = vector.shape_cast %593 : vector<1x1x8x128xf32> to vector<8x128xf32>
    %595 = arith.addf %594, %574 : vector<8x128xf32>
    %c0_273 = arith.constant 0 : index
    %c3_274 = arith.constant 3 : index
    %c0_275 = arith.constant 0 : index
    %c0_276 = arith.constant 0 : index
    %596 = vector.load %arg5[%c0_273, %c3_274, %c0_275, %c0_276] : memref<1x4x8x128xf32, #tpu.memory_space<vmem>>, vector<1x1x8x128xf32>
    %597 = vector.shape_cast %596 : vector<1x1x8x128xf32> to vector<8x128xf32>
    %598 = vector.shape_cast %595 : vector<8x128xf32> to vector<1x1x8x128xf32>
    tpu.vector_store %arg5[%c0_273, %c3_274, %c0_275, %c0_276], %598 {strides = array<i32>} : memref<1x4x8x128xf32, #tpu.memory_space<vmem>>, vector<1x1x8x128xf32>,
    return
  }
  func.func @transform_0(%arg0: i32, %arg1: i32) -> (i32, i32, i32) {
    %c1_i32 = arith.constant 1 : i32
    %0 = arith.muli %arg0, %c1_i32 : i32
    %1 = arith.addi %0, %arg1 : i32
    %c0_i32 = arith.constant 0 : i32
    %c0_i32_0 = arith.constant 0 : i32
    %c0_i32_1 = arith.constant 0 : i32
    return %c0_i32, %1, %c0_i32_0 : i32, i32, i32
  }
  func.func @transform_1(%arg0: i32, %arg1: i32) -> (i32, i32, i32) {
    %c1_i32 = arith.constant 1 : i32
    %0 = arith.muli %arg0, %c1_i32 : i32
    %1 = arith.addi %0, %arg1 : i32
    %c0_i32 = arith.constant 0 : i32
    %c0_i32_0 = arith.constant 0 : i32
    %c0_i32_1 = arith.constant 0 : i32
    return %c0_i32, %1, %c0_i32_0 : i32, i32, i32
  }
  func.func @transform_2(%arg0: i32, %arg1: i32) -> (i32, i32, i32) {
    %c1_i32 = arith.constant 1 : i32
    %0 = arith.muli %arg0, %c1_i32 : i32
    %1 = arith.addi %0, %arg1 : i32
    %c0_i32 = arith.constant 0 : i32
    %c0_i32_0 = arith.constant 0 : i32
    %c0_i32_1 = arith.constant 0 : i32
    return %c0_i32, %1, %c0_i32_0 : i32, i32, i32
  }
  func.func @transform_3(%arg0: i32, %arg1: i32) -> (i32, i32, i32, i32) {
    %c0_i32 = arith.constant 0 : i32
    %c0_i32_0 = arith.constant 0 : i32
    %c0_i32_1 = arith.constant 0 : i32
    %c0_i32_2 = arith.constant 0 : i32
    return %arg0, %c0_i32, %c0_i32_0, %c0_i32_1 : i32, i32, i32, i32
  }
}

</mosaic_0001>

<bundles_post_ra>
// kernel: _lambda_.1
= control target key start
LH: loop header
LB: loop body
LE: loop exit
PB: predicated region body
PF: predicated region fallthrough
CT: control target
= control target key end

     0   :  { %s1218_s0 = inlined_call_operand.vmem [shape: bf16[26,8,128], index: 0, kind: input, shape index: {}]   ;;  %s1219_s1 = inlined_call_operand.vmem [shape: f32[22,8,128], index: 1, kind: input, shape index: {}]   ;;  %s1220_s2 = inlined_call_operand.vmem [shape: f32[3,8,128], index: 2, kind: input, shape index: {}]   ;;  %s1221_s3 = inlined_call_operand.vmem [shape: f32[1,4,8,128], index: 3, kind: output, shape index: {}]  }
   0x1   :  { %v648_v0 = vld [vmem:[%s1218_s0] sm:$0xff]   ;;  %v805_v1 = vld [vmem:[%s1218_s0 + $0x8] sm:$0xff]   ;;  %v816_v6 = vld [vmem:[%s1218_s0 + $0x30] sm:$0xff]  }
   0x2   :  { %v807_v2 = vunpack.c.l.bf16 %v648_v0  ;;  %v809_v3 = vunpack.c.h.bf16 %v648_v0  ;;  %v653_v4 = vunpack.c.l.bf16 %v805_v1  ;;  %v654_v5 = vunpack.c.h.bf16 %v805_v1  ;;  %v827_v11 = vld [vmem:[%s1218_s0 + $0x38] sm:$0xff]   ;;  %v832_v12 = vld [vmem:[%s1218_s0 + $0x40] sm:$0xff]   ;;  %v596_v19 = vld [vmem:[%s1218_s0 + $0x10] sm:$0xff]  }
   0x3   :  { %v835_v13 = vunpack.c.h.bf16 %v816_v6  ;;  %v838_v14 = vunpack.c.l.bf16 %v827_v11  ;;  %v670_v15 = vunpack.c.h.bf16 %v827_v11  ;;  %v673_v16 = vunpack.c.l.bf16 %v832_v12  ;;  %v692_v22 = vld [vmem:[%s1218_s0 + $0x18] sm:$0xff]   ;;  %v866_v27 = vld [vmem:[%s1219_s1 + $0x40] sm:$0xff]  ;;  %v605_v28 = vld [vmem:[%s1219_s1 + $0x48] sm:$0xff] }
   0x4   :  { %v113_v7 = vmul.f32 0.5, %v807_v2  ;;  %v119_v8 = vmul.f32 0.5, %v809_v3  ;;  %v125_v9 = vmul.f32 1.442695, %v653_v4  ;;  %v128_v10 = vmul.f32 1.442695, %v654_v5 }
   0x5   :  { %v352_v17 = vmul.f32 0.5, %v835_v13  ;;  %v358_v18 = vmul.f32 0.5, %v838_v14  ;;  %v364_v20 = vmul.f32 1.442695, %v670_v15  ;;  %v367_v21 = vmul.f32 1.442695, %v673_v16 }
   0x6   :  { %702 = vtanh.f32 %v113_v7  ;;  %v91_v23 = vunpack.c.l.bf16 %v596_v19  ;;  %v854_v24 = vunpack.c.h.bf16 %v596_v19  ;;  %v859_v25 = vld [vmem:[%s1219_s1 + $0x38] sm:$0xff]  ;;  %v861_v26 = vunpack.c.l.bf16 %v692_v22  ;;  %v874_v29 = vld [vmem:[%s1219_s1 + $0x50] sm:$0xff]  ;;  %v897_v43 = vld [vmem:[%s1219_s1 + $0xa0] sm:$0xff] }
   0x7   :  { %704 = vtanh.f32 %v119_v8  ;;  %v142_v31 = vsub.f32 %v605_v28, %v859_v25  ;;  %v143_v32 = vsub.f32 %v874_v29, %v866_v27  ;;  %v882_v36 = vld [vmem:[%s1219_s1 + $0x90] sm:$0xff]  ;;  %v887_v37 = vld [vmem:[%s1219_s1 + $0x98] sm:$0xff]  ;;  %v889_v38 = vunpack.c.h.bf16 %v692_v22  ;;  %v902_v44 = vld [vmem:[%s1219_s1 + $0xa8] sm:$0xff] }
   0x8   :  { %706 = vpow2.f32 %v125_v9  ;;  %v162_v33 = vmul.f32 0.5, %v91_v23  ;;  %v205_v39 = vmax.f32 %v854_v24, %v861_v26  ;;  %v674_v42 = vunpack.c.h.bf16 %v832_v12  ;;  %v693_v45 = vld [vmem:[%s1218_s0 + $0x20] sm:$0xff]   ;;  %v591_v56 = vld [vmem:[%s1220_s2 + $0x8] sm:$0xff] }
   0x9   :  { %708 = vpow2.f32 %v128_v10  ;;  %v381_v49 = vsub.f32 %v897_v43, %v882_v36  ;;  %v382_v50 = vsub.f32 %v902_v44, %v887_v37  ;;  %v73_v51 = vld [vmem:[%s1220_s2] sm:$0xff]  ;;  %v144_v54 = vmul.f32 %v143_v32, %v142_v31  ;;  %v694_v60 = vld [vmem:[%s1218_s0 + $0x28] sm:$0xff]  }
   0xa   :  { %710 = vtanh.f32 %v352_v17  ;;  %v917_v59 = vunpack.c.l.bf16 %v693_v45  ;;  %v206_v61 = vmax.f32 %v205_v39, %v889_v38  ;;  %v401_v8 = vmul.f32 0.5, %v674_v42  ;;  %v626_v1 = vld [vmem:[%s1219_s1 + $0x80] sm:$0xff] }
   0xb   :  { %712 = vtanh.f32 %v358_v18  ;;  %v383_v18 = vmul.f32 %v382_v50, %v381_v49  ;;  %v923_v19 = vunpack.c.h.bf16 %v693_v45 }
   0xc   :  { %714 = vpow2.f32 %v364_v20 }
   0xd   :  { %716 = vpow2.f32 %v367_v21 }
   0xe   :  { %718 = vtanh.f32 %v162_v33 }
   0xf   :  { %720 = vtanh.f32 %v401_v8 }
  0x10   :  { %v703_v30 = vpop.eup %702 }
  0x11   :  { %v705_v34 = vpop.eup %704  ;;  %v115_v35 = vadd.f32 1.0, %v703_v30  ;;  %v925_v30 = vunpack.c.l.bf16 %v694_v60 }
  0x12   :  { %v707_v40 = vpop.eup %706  ;;  %v121_v41 = vadd.f32 1.0, %v705_v34  ;;  %v207_v34 = vmax.f32 %v206_v61, %v917_v59 }
  0x13   :  { %v709_v46 = vpop.eup %708  ;;  %v116_v47 = vmul.f32 0.5, %v115_v35  ;;  %v127_v48 = vmul.f32 0.0625, %v707_v40 }
  0x14   :  { %v122_v52 = vmul.f32 0.5, %v121_v41  ;;  %v130_v53 = vmul.f32 0.09375, %v709_v46  ;;  %v711_v55 = vpop.eup %710  ;;  %v208_v61 = vmax.f32 %v207_v34, %v923_v19 }
  0x15   :  { %v117_v57 = vmul.f32 0.0625, %v116_v47  ;;  %v131_v58 = vmul.f32 0.5, %v127_v48  ;;  %v713_v62 = vpop.eup %712  ;;  %v354_v7 = vadd.f32 1.0, %v711_v55 }
  0x16   :  { %v123_v63 = vmul.f32 0.0625, %v122_v52  ;;  %v132_v0 = vmul.f32 0.5, %v130_v53  ;;  %v715_v9 = vpop.eup %714  ;;  %v360_v17 = vadd.f32 1.0, %v713_v62  ;;  %v141_v45 = vmul.f32 %v130_v53, %v127_v48 }
  0x17   :  { %v118_v10 = vadd.f32 %v117_v57, %v73_v51  ;;  %v717_v20 = vpop.eup %716  ;;  %v355_v22 = vmul.f32 0.5, %v354_v7  ;;  %v366_v23 = vmul.f32 0.15625, %v715_v9  ;;  %v932_v48 = vunpack.c.h.bf16 %v694_v60 }
  0x18   :  { %v124_v21 = vadd.f32 %v591_v56, %v123_v63  ;;  %v361_v33 = vmul.f32 0.5, %v360_v17  ;;  %v369_v41 = vmul.f32 0.1875, %v717_v20  ;;  %v719_v62 = vpop.eup %718  ;;  %v938_v20 = vunpack.c.l.bf16 %v816_v6 }
  0x19   :  { %v133_v31 = vsub.f32 %v118_v10, %v131_v58  ;;  %v134_v32 = vadd.f32 %v131_v58, %v118_v10  ;;  %v356_v40 = vmul.f32 0.0625, %v355_v22  ;;  %v370_v55 = vmul.f32 0.5, %v366_v23 }
  0x1a   :  { %v135_v35 = vsub.f32 %v124_v21, %v132_v0  ;;  %v136_v39 = vadd.f32 %v132_v0, %v124_v21  ;;  %v362_v47 = vmul.f32 0.0625, %v361_v33  ;;  %v371_v0 = vmul.f32 0.5, %v369_v41 }
  0x1b   :  { %v137_v42 = vmax.f32 %v133_v31, %v859_v25  ;;  %v139_v46 = vmin.f32 %v134_v32, %v605_v28  ;;  %v357_v52 = vadd.f32 %v356_v40, %v73_v51  ;;  %v153_v25 = vadd.f32 %v144_v54, %v141_v45  ;;  %v92_v54 = vld [vmem:[%s1219_s1] sm:$0xff]  ;;  %v721_v40 = vpop.eup %720 }
  0x1c   :  { %v138_v49 = vmax.f32 %v135_v35, %v866_v27  ;;  %v140_v50 = vmin.f32 %v136_v39, %v874_v29  ;;  %v363_v58 = vadd.f32 %v591_v56, %v362_v47  ;;  %v778_v27 = vmov 0.0  }
  0x1d   :  { %vm145_vm0 = vcmp.lt.f32.partialorder %v137_v42, %v139_v46  ;;  %v149_v57 = vsub.f32 %v139_v46, %v137_v42  ;;  %v372_v7 = vsub.f32 %v357_v52, %v370_v55  ;;  %v373_v28 = vadd.f32 %v370_v55, %v357_v52  ;;  %v976_v55 = vld [vmem:[%s1219_s1 + $0x8] sm:$0xff] }
  0x1e   :  { %vm146_vm1 = vcmp.lt.f32.partialorder %v138_v49, %v140_v50  ;;  %v150_v63 = vsub.f32 %v140_v50, %v138_v49  ;;  %v374_v53 = vsub.f32 %v363_v58, %v371_v0  ;;  %v375_v9 = vadd.f32 %v371_v0, %v363_v58  ;;  %v592_v50 = vld [vmem:[%s1220_s2 + $0x10] sm:$0xff] }
  0x1f   :  { %vm147_vm2 = vmand %vm145_vm0, %vm146_vm1  ;;  %v376_v56 = vmax.f32 %v372_v7, %v882_v36  ;;  %v378_v10 = vmin.f32 %v373_v28, %v897_v43  ;;  %v380_v17 = vmul.f32 %v369_v41, %v366_v23  ;;  %v209_v22 = vmax.f32 %v208_v61, %v925_v30  ;;  %v697_v61 = vld [vmem:[%s1218_s0 + $0x48] sm:$0xff]   ;;  %v698_v7 = vld [vmem:[%s1218_s0 + $0x50] sm:$0xff]  }
  0x20   :  { %v148_v29 = vsel %vm147_vm2, 1.0, %v778_v27  ;;  %v151_v51 = vmul.f32 %v150_v63, %v149_v57  ;;  %v377_v8 = vmax.f32 %v374_v53, %v887_v37  ;;  %v379_v21 = vmin.f32 %v375_v9, %v902_v44  ;;  %v621_v37 = vld [vmem:[%s1219_s1 + $0x58] sm:$0xff] }
  0x21   :  { %vm384_vm3 = vcmp.lt.f32.partialorder %v376_v56, %v378_v10  ;;  %v388_v36 = vsub.f32 %v378_v10, %v376_v56  ;;  %v210_v6 = vmax.f32 %v209_v22, %v932_v48  ;;  %vm168_vm5 = vcmp.eq.f32.partialorder %v92_v54, 1.0  ;;  %v1005_v22 = vld [vmem:[%s1219_s1 + $0x30] sm:$0xff] }
  0x22   :  { %v943_v60 = vmul.f32 %v151_v51, %v148_v29  ;;  %vm385_vm4 = vcmp.lt.f32.partialorder %v377_v8, %v379_v21  ;;  %v389_v23 = vsub.f32 %v379_v21, %v377_v8  ;;  %v392_v31 = vadd.f32 %v383_v18, %v380_v17 }
  0x23   :  { %vm386_vm6 = vmand %vm384_vm3, %vm385_vm4  ;;  %v955_v33 = vmax.f32 %v210_v6, %v938_v20  ;;  %vm170_vm7 = vcmp.eq.f32.partialorder %v92_v54, 0.0  ;;  %v164_v41 = vadd.f32 1.0, %v719_v62  ;;  %v169_v42 = vsel %vm168_vm5, 1.0, %v778_v27 }
  0x24   :  { %v154_v43 = vsub.f32 %v153_v25, %v943_v60  ;;  %v387_v44 = vsel %vm386_vm6, 1.0, %v778_v27  ;;  %v390_v32 = vmul.f32 %v389_v23, %v388_v36  ;;  %vm407_vm8 = vcmp.eq.f32.partialorder %v621_v37, 1.0  ;;  %v699_v23 = vld [vmem:[%s1218_s0 + $0x58] sm:$0xff]  }
  0x25   :  { %v212_v35 = vsub.f32 %v854_v24, %v955_v33  ;;  %v219_v18 = vsub.f32 %v861_v26, %v955_v33  ;;  %v226_v39 = vsub.f32 %v889_v38, %v955_v33  ;;  %v233_v49 = vsub.f32 %v917_v59, %v955_v33 }
  0x26   :  { %722 = vrcp.f32 %v154_v43  ;;  %v957_v34 = vmul.f32 %v390_v32, %v387_v44  ;;  %v171_v52 = vsel %vm170_vm7, 1.0, %v778_v27  ;;  %v978_v58 = vmul.f32 5.0, %v169_v42 }
  0x27   :  { %v213_v45 = vmul.f32 1.442695, %v212_v35  ;;  %v220_v47 = vmul.f32 1.442695, %v219_v18  ;;  %v227_v57 = vmul.f32 1.442695, %v226_v39  ;;  %v987_v25 = vmul.f32 %v592_v50, %v171_v52 }
  0x28   :  { %v393_v46 = vsub.f32 %v392_v31, %v957_v34  ;;  %vm409_vm9 = vcmp.eq.f32.partialorder %v621_v37, 0.0  ;;  %v165_v62 = vmul.f32 0.5, %v164_v41  ;;  %v403_v63 = vadd.f32 1.0, %v721_v40 }
  0x29   :  { %v408_v0 = vsel %vm407_vm8, 1.0, %v778_v27  ;;  %vm216_vm10 = vcmp.eq.f32.partialorder %v976_v55, 0.0  ;;  %v234_v28 = vmul.f32 1.442695, %v233_v49  ;;  %v410_v29 = vsel %vm409_vm9, 1.0, %v778_v27 }
  0x2a   :  { %724 = vrcp.f32 %v393_v46  ;;  %v240_v51 = vsub.f32 %v923_v19, %v955_v33  ;;  %v993_v53 = vunpack.c.l.bf16 %v697_v61  ;;  %v995_v56 = vmul.f32 5.0, %v408_v0 }
  0x2b   :  { %726 = vpow2.f32 %v213_v45  ;;  %vm223_vm11 = vcmp.eq.f32.partialorder %v976_v55, 1.0  ;;  %v998_v10 = vunpack.c.h.bf16 %v697_v61  ;;  %v1000_v17 = vunpack.c.l.bf16 %v698_v7 }
  0x2c   :  { %728 = vpow2.f32 %v220_v47  ;;  %v166_v8 = vmax.f32 %v165_v62, 0.0001  ;;  %v404_v21 = vmul.f32 0.5, %v403_v63  ;;  %v217_v36 = vsel %vm216_vm10, %v854_v24, 0.0 }
  0x2d   :  { %730 = vpow2.f32 %v227_v57  ;;  %vm230_vm12 = vcmp.eq.f32.partialorder %v976_v55, 2.0  ;;  %v1014_v6 = vunpack.c.h.bf16 %v698_v7  ;;  %v224_v37 = vsel %vm223_vm11, %v861_v26, 0.0  ;;  %v700_v26 = vld [vmem:[%s1218_s0 + $0x60] sm:$0xff]  }
  0x2e   :  { %732 = vpow2.f32 %v234_v28  ;;  %v241_v44 = vmul.f32 1.442695, %v240_v51  ;;  %v247_v32 = vsub.f32 %v925_v30, %v955_v33  ;;  %v415_v24 = vmul.f32 %v592_v50, %v410_v29 }
  0x2f   :  { %vm160_vm13 = vcmp.gt.f32.partialorder %v1005_v22, 0.0  ;;  %v1022_v35 = vunpack.c.l.bf16 %v699_v23  ;;  %v167_v40 = vmin.f32 %v166_v8, 0.9999  ;;  %v405_v41 = vmax.f32 %v404_v21, 0.0001 }
  0x30   :  { %v723_v9 = vpop.eup %722  ;;  %v231_v42 = vsel %vm230_vm12, %v889_v38, 0.0  ;;  %v225_v47 = vadd.f32 %v224_v37, %v217_v36  ;;  %v254_v49 = vsub.f32 %v932_v48, %v955_v33  ;;  %v1031_v50 = vunpack.c.h.bf16 %v699_v23 }
  0x31   :  { %v156_v54 = vmul.f32 %v723_v9, %v154_v43  ;;  %v444_v43 = vmax.f32 %v993_v53, %v998_v10  ;;  %734 = vpow2.f32 %v241_v44  ;;  %v248_v38 = vmul.f32 1.442695, %v247_v32 }
  0x32   :  { %v177_v0 = vmul.f32 %v167_v40, %v167_v40  ;;  %vm237_vm14 = vcmp.eq.f32.partialorder %v976_v55, 3.0  ;;  %v1038_v7 = vunpack.c.l.bf16 %v700_v26  ;;  %v261_v21 = vsub.f32 %v938_v20, %v955_v33 }
  0x33   :  { %v157_v31 = vsub.f32 2.0, %v156_v54  ;;  %v445_v18 = vmax.f32 %v444_v43, %v1000_v17  ;;  %v406_v54 = vmin.f32 %v405_v41, 0.9999  ;;  %v1047_v36 = vunpack.c.h.bf16 %v700_v26 }
  0x34   :  { %v725_v45 = vpop.eup %724  ;;  %736 = vpow2.f32 %v248_v38  ;;  %v1053_v32 = vsel %vm160_vm13, 1.0, %v778_v27  ;;  %vm244_vm2 = vcmp.eq.f32.partialorder %v976_v55, 4.0  ;;  %vm251_vm4 = vcmp.eq.f32.partialorder %v976_v55, 5.0 }
  0x35   :  { %v158_v39 = vmul.f32 %v723_v9, %v157_v31  ;;  %v446_v52 = vmax.f32 %v445_v18, %v1014_v6  ;;  %v727_v57 = vpop.eup %726  ;;  %v395_v62 = vmul.f32 %v725_v45, %v393_v46  ;;  %v255_v46 = vmul.f32 1.442695, %v254_v49 }
  0x36   :  { %v729_v63 = vpop.eup %728  ;;  %v416_v26 = vmul.f32 %v406_v54, %v406_v54  ;;  %v232_v49 = vadd.f32 %v231_v42, %v225_v47  ;;  %vm258_vm5 = vcmp.eq.f32.partialorder %v976_v55, 6.0  ;;  %vm265_vm11 = vcmp.eq.f32.partialorder %v976_v55, 7.0 }
  0x37   :  { %v1035_v61 = vmul.f32 %v158_v39, %v943_v60  ;;  %v447_v28 = vmax.f32 %v446_v52, %v1022_v35  ;;  %v731_v29 = vpop.eup %730  ;;  %v396_v9 = vsub.f32 2.0, %v395_v62  ;;  %v222_v8 = vadd.f32 %v729_v63, %v727_v57  ;;  %v598_v60 = vld [vmem:[%s1219_s1 + $0x10] sm:$0xff] }
  0x38   :  { %v733_v44 = vpop.eup %732  ;;  %v274_v39 = vmax.f32 %v807_v2, 0.0  ;;  %v178_v52 = vmul.f32 %v177_v0, %v987_v25  ;;  %v262_v57 = vmul.f32 1.442695, %v261_v21  ;;  %738 = vpow2.f32 %v255_v46 }
  0x39   :  { %v173_v51 = vsub.f32 %v167_v40, %v1035_v61  ;;  %v448_v23 = vmax.f32 %v447_v28, %v1031_v50  ;;  %v397_v31 = vmul.f32 %v725_v45, %v396_v9  ;;  %v229_v37 = vadd.f32 %v731_v29, %v222_v8 }
  0x3a   :  { %v275_v40 = vmul.f32 %v807_v2, %v598_v60  ;;  %v238_v45 = vsel %vm237_vm14, %v917_v59, 0.0  ;;  %v277_v9 = vand.u32 2147483647, %v807_v2  ;;  %740 = vpow2.f32 %v262_v57 }
  0x3b   :  { %v174_v43 = vmul.f32 %v173_v51, %v173_v51  ;;  %v449_v18 = vmax.f32 %v448_v23, %v1038_v7  ;;  %v1059_v41 = vmul.f32 %v397_v31, %v957_v34  ;;  %v236_v34 = vadd.f32 %v733_v44, %v229_v37  ;;  %v735_v0 = vpop.eup %734  ;;  %v1087_v23 = vld [vmem:[%s1219_s1 + $0x60] sm:$0xff] }
  0x3c   :  { %v1068_v38 = vsub.f32 %v274_v39, %v275_v40  ;;  %v417_v51 = vmul.f32 %v416_v26, %v415_v24  ;;  %vm455_vm15 = vcmp.eq.f32.partialorder %v1087_v23, 0.0  ;;  %vm462_vm0 = vcmp.eq.f32.partialorder %v1087_v23, 1.0 }
  0x3d   :  { %v1066_v62 = vmax.f32 %v449_v18, %v1047_v36  ;;  %v175_v63 = vmul.f32 %v174_v43, %v978_v58  ;;  %v412_v28 = vsub.f32 %v406_v54, %v1059_v41  ;;  %v243_v43 = vadd.f32 %v735_v0, %v236_v34 }
  0x3e   :  { %v737_v37 = vpop.eup %736  ;;  %v1093_v18 = vadd.f32 %v238_v45, %v232_v49  ;;  %v278_v40 = vsub.f32 0.0, %v277_v9  ;;  %v288_v49 = vand.u32 2147483647, %v809_v3  ;;  %vm469_vm3 = vcmp.eq.f32.partialorder %v1087_v23, 2.0 }
  0x3f   :  { %v451_v42 = vsub.f32 %v993_v53, %v1066_v62  ;;  %v458_v59 = vsub.f32 %v998_v10, %v1066_v62  ;;  %v465_v25 = vsub.f32 %v1000_v17, %v1066_v62  ;;  %v472_v47 = vsub.f32 %v1014_v6, %v1066_v62 }
  0x40   :  { %v413_v29 = vmul.f32 %v412_v28, %v412_v28  ;;  %v479_v58 = vsub.f32 %v1022_v35, %v1066_v62  ;;  %v179_v46 = vadd.f32 %v178_v52, %v175_v63  ;;  %v486_v24 = vsub.f32 %v1031_v50, %v1066_v62 }
  0x41   :  { %v452_v54 = vmul.f32 1.442695, %v451_v42  ;;  %v459_v8 = vmul.f32 1.442695, %v458_v59  ;;  %v466_v60 = vmul.f32 1.442695, %v465_v25  ;;  %v493_v2 = vsub.f32 %v1038_v7, %v1066_v62 }
  0x42   :  { %v414_v21 = vmul.f32 %v413_v29, %v995_v56  ;;  %v473_v31 = vmul.f32 1.442695, %v472_v47  ;;  %v1098_v56 = vld [vmem:[%s1219_s1 + $0x88] sm:$0xff]  ;;  %v480_v39 = vmul.f32 1.442695, %v479_v58  ;;  %v500_v57 = vsub.f32 %v1047_v36, %v1066_v62  ;;  %v739_v28 = vpop.eup %738 }
  0x43   :  { %742 = vpow2.f32 %v452_v54  ;;  %v487_v52 = vmul.f32 1.442695, %v486_v24  ;;  %v250_v45 = vadd.f32 %v737_v37, %v243_v43  ;;  %vm399_vm1 = vcmp.gt.f32.partialorder %v1098_v56, 0.0 }
  0x44   :  { %v418_v44 = vadd.f32 %v417_v51, %v414_v21  ;;  %744 = vpow2.f32 %v459_v8  ;;  %v494_v63 = vmul.f32 1.442695, %v493_v2  ;;  %v279_v34 = vmul.f32 1.442695, %v278_v40  ;;  %v741_v58 = vpop.eup %740 }
  0x45   :  { %746 = vpow2.f32 %v466_v60  ;;  %v289_v42 = vsub.f32 0.0, %v288_v49  ;;  %v456_v59 = vsel %vm455_vm15, %v993_v53, 0.0  ;;  %v463_v25 = vsel %vm462_vm0, %v998_v10, 0.0 }
  0x46   :  { %v419_v26 = vadd.f32 %v418_v44, %v179_v46  ;;  %748 = vpow2.f32 %v473_v31  ;;  %v306_v47 = vsub.f32 %v1035_v61, %v1053_v32  ;;  %v501_v0 = vmul.f32 1.442695, %v500_v57 }
  0x47   :  { %750 = vpow2.f32 %v480_v39  ;;  %v290_v29 = vmul.f32 1.442695, %v289_v42  ;;  %v257_v51 = vadd.f32 %v739_v28, %v250_v45  ;;  %v1122_v53 = vsel %vm399_vm1, 1.0, %v778_v27 }
  0x48   :  { %556 = vst [vmem:[%s1221_s3] sm:$0xff] %v419_v26  ;;  %752 = vpow2.f32 %v487_v52  ;;  %v516_v10 = vand.u32 2147483647, %v835_v13  ;;  %v464_v9 = vadd.f32 %v463_v25, %v456_v59  ;;  %v527_v54 = vand.u32 2147483647, %v838_v14 }
  0x49   :  { %754 = vpow2.f32 %v494_v63  ;;  %v470_v8 = vsel %vm469_vm3, %v1000_v17, 0.0  ;;  %vm476_vm6 = vcmp.eq.f32.partialorder %v1087_v23, 3.0  ;;  %v545_v46 = vsub.f32 %v1059_v41, %v1122_v53 }
  0x4a   :  { %756 = vpow2.f32 %v279_v34  ;;  %v517_v27 = vsub.f32 0.0, %v516_v10  ;;  %v528_v21 = vsub.f32 0.0, %v527_v54  ;;  %v307_v24 = vand.u32 2147483647, %v306_v47 }
  0x4b   :  { %758 = vpow2.f32 %v290_v29  ;;  %v264_v31 = vadd.f32 %v741_v58, %v257_v51  ;;  %v309_v44 = vmul.f32 0.5, %v306_v47  ;;  %v245_v17 = vsel %vm244_vm2, %v923_v19, 0.0 }
  0x4c   :  { %760 = vpow2.f32 %v501_v0  ;;  %v518_v37 = vmul.f32 1.442695, %v517_v27  ;;  %v529_v39 = vmul.f32 1.442695, %v528_v21  ;;  %vm1137_vm7 = vcmp.lt.f32.partialorder %v307_v24, 1.0 }
  0x4d   :  { %v743_v61 = vpop.eup %742  ;;  %v615_v26 = vadd.f32 -0.5, %v307_v24  ;;  %v471_v41 = vadd.f32 %v470_v8, %v464_v9  ;;  %v310_v49 = vmul.f32 %v309_v44, %v306_v47  ;;  %v477_v63 = vsel %vm476_vm6, %v1014_v6, 0.0 }
  0x4e   :  { %v745_v60 = vpop.eup %744  ;;  %762 = vpow2.f32 %v518_v37  ;;  %v546_v28 = vand.u32 2147483647, %v545_v46  ;;  %v548_v34 = vmul.f32 0.5, %v545_v46  ;;  %vm483_vm8 = vcmp.eq.f32.partialorder %v1087_v23, 4.0 }
  0x4f   :  { %v747_v43 = vpop.eup %746  ;;  %v461_v2 = vadd.f32 %v745_v60, %v743_v61  ;;  %764 = vpow2.f32 %v529_v39  ;;  %v312_v42 = vsel %vm1137_vm7, %v310_v49, %v615_v26  ;;  %v246_v25 = vadd.f32 %v245_v17, %v1093_v18  ;;  %v599_v17 = vld [vmem:[%s1219_s1 + $0x18] sm:$0xff] }
  0x50   :  { %v749_v52 = vpop.eup %748  ;;  %766 = vlog2.f32 %v264_v31  ;;  %vm547_vm9 = vcmp.lt.f32.partialorder %v546_v28, 1.0  ;;  %v549_v47 = vmul.f32 %v548_v34, %v545_v46  ;;  %v640_v0 = vadd.f32 -0.5, %v546_v28  ;;  %v623_v34 = vld [vmem:[%s1219_s1 + $0x68] sm:$0xff] }
  0x51   :  { %v468_v57 = vadd.f32 %v747_v43, %v461_v2  ;;  %v751_v45 = vpop.eup %750  ;;  %v252_v6 = vsel %vm251_vm4, %v925_v30, 0.0  ;;  %v478_v51 = vadd.f32 %v477_v63, %v471_v41  ;;  %v313_v58 = vmul.f32 %v312_v42, %v1053_v32 }
  0x52   :  { %v753_v59 = vpop.eup %752  ;;  %v484_v54 = vsel %vm483_vm8, %v1022_v35, 0.0  ;;  %v551_v61 = vsel %vm547_vm9, %v549_v47, %v640_v0  ;;  %vm490_vm10 = vcmp.eq.f32.partialorder %v1087_v23, 5.0  ;;  %v253_v21 = vadd.f32 %v252_v6, %v246_v25 }
  0x53   :  { %v475_v19 = vadd.f32 %v749_v52, %v468_v57  ;;  %v755_v29 = vpop.eup %754  ;;  %v552_v60 = vmul.f32 %v551_v61, %v1122_v53  ;;  %v259_v30 = vsel %vm258_vm5, %v932_v48, 0.0  ;;  %v485_v43 = vadd.f32 %v484_v54, %v478_v51  ;;  %v600_v48 = vld [vmem:[%s1219_s1 + $0x20] sm:$0xff] }
  0x54   :  { %v757_v9 = vpop.eup %756  ;;  %v491_v2 = vsel %vm490_vm10, %v1031_v50, 0.0  ;;  %v260_v55 = vadd.f32 %v259_v30, %v253_v21  ;;  %v266_v40 = vsel %vm265_vm11, %v938_v20, 0.0  ;;  %vm497_vm12 = vcmp.eq.f32.partialorder %v1087_v23, 6.0  ;;  %v601_v50 = vld [vmem:[%s1219_s1 + $0x28] sm:$0xff] }
  0x55   :  { %v482_v10 = vadd.f32 %v751_v45, %v475_v19  ;;  %v759_v8 = vpop.eup %758  ;;  %v281_v18 = vadd.f32 1.0, %v757_v9  ;;  %v553_v35 = vadd.f32 %v552_v60, %v313_v58  ;;  %v492_v57 = vadd.f32 %v491_v2, %v485_v43  ;;  %v624_v19 = vld [vmem:[%s1219_s1 + $0x70] sm:$0xff] }
  0x56   :  { %v761_v46 = vpop.eup %760  ;;  %v292_v24 = vadd.f32 1.0, %v759_v8  ;;  %vm504_vm13 = vcmp.eq.f32.partialorder %v1087_v23, 7.0  ;;  %v285_v49 = vmax.f32 %v809_v3, 0.0  ;;  %v286_v20 = vmul.f32 %v809_v3, %v599_v17 }
  0x57   :  { %v489_v27 = vadd.f32 %v753_v59, %v482_v10  ;;  %768 = vlog2.f32 %v281_v18  ;;  %646 = vst [vmem:[%s1221_s3 + $0x18] sm:$0xff] %v553_v35  ;;  %v297_v45 = vsub.f32 %v653_v4, %v600_v48  ;;  %v498_v63 = vsel %vm497_vm12, %v1038_v7, 0.0  ;;  %v625_v4 = vld [vmem:[%s1219_s1 + $0x78] sm:$0xff] }
  0x58   :  { %770 = vlog2.f32 %v292_v24  ;;  %v763_v37 = vpop.eup %762  ;;  %v299_v28 = vsub.f32 %v654_v5, %v601_v50  ;;  %v267_v3 = vadd.f32 %v266_v40, %v260_v55  ;;  %v505_v42 = vsel %vm504_vm13, %v1047_v36, 0.0 }
  0x59   :  { %v496_v31 = vadd.f32 %v755_v29, %v489_v27  ;;  %v765_v39 = vpop.eup %764  ;;  %v520_v26 = vadd.f32 1.0, %v763_v37  ;;  %v499_v5 = vadd.f32 %v498_v63, %v492_v57  ;;  %v287_v7 = vsub.f32 %v285_v49, %v286_v20 }
  0x5a   :  { %v767_v52 = vpop.eup %766  ;;  %v531_v41 = vadd.f32 1.0, %v765_v39  ;;  %v298_v59 = vmul.f32 %v297_v45, %v297_v45  ;;  %v513_v25 = vmax.f32 %v835_v13, 0.0  ;;  %v300_v0 = vmul.f32 %v299_v28, %v299_v28 }
  0x5b   :  { %v503_v44 = vadd.f32 %v761_v46, %v496_v31  ;;  %v269_v23 = vmul.f32 0.6931472, %v767_v52  ;;  %v514_v29 = vmul.f32 %v623_v34, %v835_v13  ;;  %v524_v6 = vmax.f32 %v838_v14, 0.0 }
  0x5c   :  { %v525_v36 = vmul.f32 %v838_v14, %v624_v19  ;;  %v536_v9 = vsub.f32 %v670_v15, %v625_v4  ;;  %v538_v54 = vsub.f32 %v673_v16, %v626_v1  ;;  %v506_v8 = vadd.f32 %v505_v42, %v499_v5 }
  0x5d   :  { %772 = vlog2.f32 %v503_v44  ;;  %v270_v10 = vadd.f32 %v269_v23, %v955_v33  ;;  %v301_v60 = vadd.f32 %v300_v0, %v298_v59  ;;  %v515_v46 = vsub.f32 %v513_v25, %v514_v29 }
  0x5e   :  { %774 = vlog2.f32 %v520_v26  ;;  %v526_v21 = vsub.f32 %v524_v6, %v525_v36  ;;  %v537_v33 = vmul.f32 %v536_v9, %v536_v9  ;;  %v539_v43 = vmul.f32 %v538_v54, %v538_v54 }
  0x5f   :  { %776 = vlog2.f32 %v531_v41  ;;  %v271_v30 = vsub.f32 %v270_v10, %v267_v3  ;;  %v542_v40 = vmul.f32 %v1098_v56, %v1122_v53 }
  0x60   :  { %v540_v48 = vadd.f32 %v539_v43, %v537_v33 }
  0x61   :  { %v769_v47 = vpop.eup %768  ;;  %v272_v37 = vmul.f32 %v271_v30, %v1053_v32 }
  0x62   :  { %v771_v51 = vpop.eup %770  ;;  %v283_v58 = vmul.f32 0.6931472, %v769_v47 }
  0x63   :  { %v294_v61 = vmul.f32 0.6931472, %v771_v51 }
  0x64   :  { %v284_v27 = vadd.f32 %v283_v58, %v1068_v38  ;;  %v303_v38 = vmul.f32 %v1005_v22, %v1053_v32 }
  0x65   :  { %v295_v13 = vadd.f32 %v294_v61, %v287_v7 }
  0x67   :  { %v773_v18 = vpop.eup %772  ;;  %v296_v11 = vadd.f32 %v295_v13, %v284_v27 }
  0x68   :  { %v775_v14 = vpop.eup %774  ;;  %v508_v24 = vmul.f32 0.6931472, %v773_v18 }
  0x69   :  { %v777_v31 = vpop.eup %776  ;;  %v522_v15 = vmul.f32 0.6931472, %v775_v14  ;;  %v302_v35 = vadd.f32 %v301_v60, %v296_v11 }
  0x6a   :  { %v509_v12 = vadd.f32 %v508_v24, %v1066_v62  ;;  %v533_v16 = vmul.f32 0.6931472, %v777_v31 }
  0x6b   :  { %v523_v2 = vadd.f32 %v522_v15, %v515_v46  ;;  %v304_v26 = vmul.f32 %v303_v38, %v302_v35 }
  0x6c   :  { %v510_v44 = vsub.f32 %v509_v12, %v506_v8  ;;  %v534_v17 = vadd.f32 %v533_v16, %v526_v21 }
  0x6e   :  { %v511_v39 = vmul.f32 %v510_v44, %v1122_v53  ;;  %v535_v55 = vadd.f32 %v534_v17, %v523_v2 }
  0x70   :  { %v512_v50 = vadd.f32 %v511_v39, %v272_v37  ;;  %v541_v62 = vadd.f32 %v540_v48, %v535_v55 }
  0x72   :  { %v543_v52 = vmul.f32 %v542_v40, %v541_v62  ;;  %642 = vst [vmem:[%s1221_s3 + $0x8] sm:$0xff] %v512_v50 }
  0x74   :  { %v544_v22 = vadd.f32 %v543_v52, %v304_v26 }
  0x76   :  { %644 = vst [vmem:[%s1221_s3 + $0x10] sm:$0xff] %v544_v22 }

</bundles_post_ra>
